<compile_context>
chip_gen: v5e
topology: v5e:2x2
jax: 0.10.0
libtpu: 0.0.40
codegen_flags: <defaults>
</compile_context>

<pallas_src>
import functools
import math

import jax
import jax.numpy as jnp
from jax import lax
from jax.experimental import pallas as pl
from jax.experimental.pallas import tpu as pltpu


# ---------------------------------------------------------------------------
# Kernel 1: fused QKV projection + full-width split-half RoPE, per (batch, seq-tile)
# ---------------------------------------------------------------------------
def _qkv_rope_kernel(
    x_ref,    # (1, ts, dim)        bf16
    w_ref,    # (dim, hq + 2*hk)    bf16  [wq(scaled, split-half cols) | wk(split-half) | wv]
    a_ref,    # (ts, hq + hk)       f32   coefficient of x itself
    bl_ref,   # (ts, hq + hk)       f32   coefficient of the partner hd/2 lanes to the right
    br_ref,   # (ts, hq + hk)       f32   coefficient of the partner hd/2 lanes to the left
    q_ref,    # (1, ts, hq)         bf16 out (RoPE applied, softmax scale folded in)
    kv_ref,   # (1, ts, 2*hk)       bf16 out (k with RoPE | v)
    *,
    hq: int,
    hk: int,
    hd2: int,
):
    rope_w = hq + hk
    x = x_ref[0]  # (ts, dim) bf16

    # single fused projection: bf16 inputs, f32 accumulation on the MXU
    xqkv = jnp.dot(x, w_ref[...], preferred_element_type=jnp.float32)  # (ts, hq+2hk)

    xqk = xqkv[:, :rope_w]
    # partner values (circular lane shifts; wrap-around positions are zeroed by bl/br maps):
    #   left[:, i]  = xqk[:, i + hd2]   (o partner for first-half lanes)
    #   right[:, i] = xqk[:, i - hd2]   (e partner for second-half lanes)
    left = jnp.concatenate([xqk[:, hd2:], xqk[:, :hd2]], axis=-1)
    right = jnp.concatenate([xqk[:, rope_w - hd2:], xqk[:, :rope_w - hd2]], axis=-1)
    roped = a_ref[...] * xqk + bl_ref[...] * left + br_ref[...] * right

    q_ref[0] = roped[:, :hq].astype(q_ref.dtype)
    kv_ref[0, :, :hk] = roped[:, hq:].astype(kv_ref.dtype)
    kv_ref[0, :, hk:] = xqkv[:, rope_w:].astype(kv_ref.dtype)


# ---------------------------------------------------------------------------
# Kernel 2: streaming (flash) GQA attention + output projection
#   grid = (batch, q-tiles, kv-tiles), kv axis last / "arbitrary"
# ---------------------------------------------------------------------------
def _flash_attn_kernel(
    q_ref,    # (1, tq, hq)      bf16 (already scaled by 1/sqrt(hd))
    kv_ref,   # (1, tk, 2*hk)    bf16  [k | v]
    wo_ref,   # (hq, dim)        bf16
    o_ref,    # (1, tq, dim)     out dtype
    acc_ref,  # (tq, hq)         f32  running P@V accumulator
    m_ref,    # (tq, n_heads)    f32  running row max
    l_ref,    # (tq, n_heads)    f32  running row sum
    *,
    n_heads: int,
    n_kv_heads: int,
    head_dim: int,
    exp_in_bf16: bool,
):
    hd = head_dim
    hpg = n_heads // n_kv_heads
    ghd = hpg * hd
    hk = n_kv_heads * hd
    tk = kv_ref.shape[1]
    kv_idx = pl.program_id(2)

    @pl.when(kv_idx == 0)
    def _():
        m_ref[...] = jnp.full_like(m_ref, -jnp.inf)
        l_ref[...] = jnp.zeros_like(l_ref)
        acc_ref[...] = jnp.zeros_like(acc_ref)

    if exp_in_bf16:
        # ones block for MXU row-sums (N-pass granularity >= 128 lanes anyway)
        ones_bf = jnp.ones((tk, 128), dtype=jnp.bfloat16)

    for g in range(n_kv_heads):
        k_g = kv_ref[0, :, g * hd:(g + 1) * hd]            # (tk, hd) bf16
        v_g = kv_ref[0, :, hk + g * hd:hk + (g + 1) * hd]  # (tk, hd) bf16
        acc_g = acc_ref[:, g * ghd:(g + 1) * ghd]          # (tq, ghd) f32
        new_parts = []
        for j in range(hpg):
            h = g * hpg + j
            q_h = q_ref[0, :, h * hd:(h + 1) * hd]         # (tq, hd) bf16
            # scores: contract last dims directly (no k.T relayout), f32 accumulate
            s = lax.dot_general(q_h, k_g, (((1,), (1,)), ((), ())),
                                preferred_element_type=jnp.float32)   # (tq, tk)
            m_prev = m_ref[:, h:h + 1]
            m_new = jnp.maximum(m_prev, jnp.max(s, axis=-1, keepdims=True))
            alpha = jnp.exp(m_prev - m_new)                # f32 rescale factor
            if exp_in_bf16:
                # v6e/v7x: bf16 EUP exp + MXU row-sum (frees VPU/XLU)
                p = jnp.exp((s - m_new).astype(jnp.bfloat16))
                row_sum = jnp.dot(p, ones_bf,
                                  preferred_element_type=jnp.float32)[:, :1]
            else:
                # v5e: keep softmax math in f32 (no bf16 VPU/EUP there)
                p_f32 = jnp.exp(s - m_new)
                row_sum = jnp.sum(p_f32, axis=-1, keepdims=True)
                p = p_f32.astype(jnp.bfloat16)
            l_ref[:, h:h + 1] = alpha * l_ref[:, h:h + 1] + row_sum
            m_ref[:, h:h + 1] = m_new
            o_j = jnp.dot(p, v_g, preferred_element_type=jnp.float32)  # (tq, hd) f32
            new_parts.append(alpha * acc_g[:, j * hd:(j + 1) * hd] + o_j)
        # one 128-lane-aligned slab store per kv group (no odd 64-lane stores)
        acc_ref[:, g * ghd:(g + 1) * ghd] = (
            new_parts[0] if hpg == 1 else jnp.concatenate(new_parts, axis=-1))

    @pl.when(kv_idx == pl.num_programs(2) - 1)
    def _():
        inv_l = pl.reciprocal(l_ref[...], approx=True)     # (tq, n_heads)
        if n_heads > 1:
            ctx = jnp.concatenate(
                [acc_ref[:, h * hd:(h + 1) * hd] * inv_l[:, h:h + 1]
                 for h in range(n_heads)], axis=-1)        # (tq, hq)
        else:
            ctx = acc_ref[...] * inv_l
        o_ref[0] = jnp.dot(ctx.astype(jnp.bfloat16), wo_ref[...],
                           preferred_element_type=jnp.float32).astype(o_ref.dtype)


# ---------------------------------------------------------------------------
# Wrapper: parameter plumbing + two pallas_calls
# ---------------------------------------------------------------------------
def _pick_tile(n, target):
    """Largest tile <= target dividing n, keeping (8,128)-friendly shapes."""
    t = min(target, n)
    if n % 128 == 0:
        t = max(128, (t // 128) * 128)
        while n % t:
            t -= 128
        return t
    if n % 8 == 0:
        t = max(8, (t // 8) * 8)
        while n % t:
            t -= 8
        return t
    return n  # awkward length: single full-extent tile (see TODO at top)


def _vmem_limit(block_bytes):
    total = int(sum(block_bytes) * 1.3) + (2 << 20)
    return int(max(16 << 20, min(total, 128 << 20)))


def attention_forward(x, wq, wk, wv, wo, freqs_cis, *, n_heads, n_kv_heads, head_dim,
                      seq_block=512, q_block=256, kv_block=512,
                      exp_in_bf16=True, out_dtype=None):
    """x: (bsz, seq, dim); wq/wk/wv/wo are PyTorch-Linear weights (out_features, in_features);
    freqs_cis: (max_seq, head_dim//2, 2, 2).  mask=None / attn_impl='sdpa' path only.
    exp_in_bf16: True for v6e/v7x (bf16 EUP), set False on v5e."""
    bsz, seq_len, dim = x.shape
    hq = n_heads * head_dim
    hk = n_kv_heads * head_dim
    hd2 = head_dim // 2
    rope_w = hq + hk
    out_dtype = x.dtype if out_dtype is None else out_dtype

    ts = _pick_tile(seq_len, seq_block)   # seq tile for projections/RoPE
    tq = _pick_tile(seq_len, q_block)     # query tile for attention
    tk = _pick_tile(seq_len, kv_block)    # kv tile for attention streaming

    # --- split-half (de-interleave) column permutation per head: [x0,x2,... | x1,x3,...] ---
    d = jnp.arange(head_dim)
    new_order = jnp.concatenate([d[0::2], d[1::2]])  # original feature index at each new pos

    def head_perm(nh):
        return (jnp.arange(nh)[:, None] * head_dim + new_order[None, :]).reshape(-1)

    scale = 1.0 / math.sqrt(head_dim)
    wqT = wq.T[:, head_perm(n_heads)] * scale        # (dim, hq), scale folded in
    wkT = wk.T[:, head_perm(n_kv_heads)]             # (dim, hk)
    wvT = wv.T                                       # (dim, hk)
    wqkv = jnp.concatenate([wqT, wkT, wvT], axis=1).astype(jnp.bfloat16)  # (dim, hq+2hk)
    woT = wo.T.astype(jnp.bfloat16)                  # (hq, dim)

    # --- full-width RoPE coefficient maps over the q|k prefix (head-periodic, so one tile
    #     pattern of width head_dim repeated n_heads+n_kv_heads times) ---
    fc = freqs_cis[:seq_len].astype(jnp.float32)     # (seq, hd/2, 2, 2)
    f00, f01 = fc[..., 0, 0], fc[..., 0, 1]
    f10, f11 = fc[..., 1, 0], fc[..., 1, 1]
    zeros = jnp.zeros_like(f00)
    n_rope_heads = n_heads + n_kv_heads
    a_map = jnp.tile(jnp.concatenate([f00, f11], axis=-1), (1, n_rope_heads))   # (seq, rope_w)
    bl_map = jnp.tile(jnp.concatenate([f01, zeros], axis=-1), (1, n_rope_heads))
    br_map = jnp.tile(jnp.concatenate([zeros, f10], axis=-1), (1, n_rope_heads))

    x_bf = x.astype(jnp.bfloat16)

    # ---- kernel 1: fused QKV projection + RoPE ----
    k1_vmem = _vmem_limit([
        2 * ts * dim * 2,                 # x blocks (double buffered, bf16)
        dim * (hq + 2 * hk) * 2,          # fused weight (single buffered)
        3 * 2 * ts * rope_w * 4,          # three f32 coefficient maps
        2 * ts * hq * 2,                  # q output
        2 * ts * 2 * hk * 2,              # kv output
    ])
    q_rot, kv_pack = pl.pallas_call(
        functools.partial(_qkv_rope_kernel, hq=hq, hk=hk, hd2=hd2),
        out_shape=(
            jax.ShapeDtypeStruct((bsz, seq_len, hq), jnp.bfloat16),
            jax.ShapeDtypeStruct((bsz, seq_len, 2 * hk), jnp.bfloat16),
        ),
        grid=(bsz, seq_len // ts),
        in_specs=[
            pl.BlockSpec((1, ts, dim), lambda b, s: (b, s, 0)),
            pl.BlockSpec((dim, hq + 2 * hk), lambda b, s: (0, 0),
                         pipeline_mode=pl.Buffered(1)),
            pl.BlockSpec((ts, rope_w), lambda b, s: (s, 0)),
            pl.BlockSpec((ts, rope_w), lambda b, s: (s, 0)),
            pl.BlockSpec((ts, rope_w), lambda b, s: (s, 0)),
        ],
        out_specs=(
            pl.BlockSpec((1, ts, hq), lambda b, s: (b, s, 0)),
            pl.BlockSpec((1, ts, 2 * hk), lambda b, s: (b, s, 0)),
        ),
        compiler_params=pltpu.CompilerParams(
            dimension_semantics=("parallel", "parallel"),
            vmem_limit_bytes=k1_vmem),
    )(x_bf, wqkv, a_map, bl_map, br_map)

    # ---- kernel 2: streaming attention + output projection ----
    out_itemsize = jnp.dtype(out_dtype).itemsize
    k2_vmem = _vmem_limit([
        2 * tq * hq * 2,                          # q blocks
        2 * tk * 2 * hk * 2,                      # kv blocks (streamed)
        hq * dim * 2,                             # wo (single buffered)
        2 * tq * dim * out_itemsize,              # output blocks
        tq * hq * 4 + 2 * tq * n_heads * 4,       # acc / m / l scratch
    ])
    out = pl.pallas_call(
        functools.partial(_flash_attn_kernel, n_heads=n_heads, n_kv_heads=n_kv_heads,
                          head_dim=head_dim, exp_in_bf16=exp_in_bf16),
        out_shape=jax.ShapeDtypeStruct((bsz, seq_len, dim), out_dtype),
        grid=(bsz, seq_len // tq, seq_len // tk),
        in_specs=[
            pl.BlockSpec((1, tq, hq), lambda b, i, k: (b, i, 0)),
            pl.BlockSpec((1, tk, 2 * hk), lambda b, i, k: (b, k, 0)),
            pl.BlockSpec((hq, dim), lambda b, i, k: (0, 0),
                         pipeline_mode=pl.Buffered(1)),
        ],
        out_specs=pl.BlockSpec((1, tq, dim), lambda b, i, k: (b, i, 0)),
        scratch_shapes=[
            pltpu.VMEM((tq, hq), jnp.float32),        # running accumulator
            pltpu.VMEM((tq, n_heads), jnp.float32),   # running max
            pltpu.VMEM((tq, n_heads), jnp.float32),   # running sum
        ],
        compiler_params=pltpu.CompilerParams(
            dimension_semantics=("parallel", "parallel", "arbitrary"),
            vmem_limit_bytes=k2_vmem),
    )(q_rot, kv_pack, woT)

    return out


# ---------------------------------------------------------------------------
# Pure-JAX reference mirroring the PyTorch module exactly (for verification)
# ---------------------------------------------------------------------------
def attention_reference(x, wq, wk, wv, wo, freqs_cis, *, n_heads, n_kv_heads, head_dim):
    bsz, seq_len, dim = x.shape
    heads_per_group = n_heads // n_kv_heads

    xq = x @ wq.T
    xk = x @ wk.T
    xv = x @ wv.T
    xq = xq.reshape(bsz, seq_len, n_heads, head_dim)
    xk = xk.reshape(bsz, seq_len, n_kv_heads, head_dim)
    xv = xv.reshape(bsz, seq_len, n_kv_heads, head_dim)

    # apply_rotrary_emb
    xq_ = xq.reshape(bsz, seq_len, n_heads, head_dim // 2, 1, 2)
    xk_ = xk.reshape(bsz, seq_len, n_kv_heads, head_dim // 2, 1, 2)
    fc = freqs_cis[:seq_len].reshape(1, seq_len, 1, head_dim // 2, 2, 2).astype(jnp.float32)
    xq = (xq_ * fc).sum(axis=5).reshape(bsz, seq_len, n_heads, head_dim)
    xk = (xk_ * fc).sum(axis=5).reshape(bsz, seq_len, n_kv_heads, head_dim)

    # repeat_kv (repeat_interleave along head axis)
    xk = jnp.repeat(xk, heads_per_group, axis=2)
    xv = jnp.repeat(xv, heads_per_group, axis=2)

    # scaled_dot_product_attention (no mask, non-causal), heads first
    q = xq.transpose(0, 2, 1, 3)
    k = xk.transpose(0, 2, 1, 3)
    v = xv.transpose(0, 2, 1, 3)
    scores = jnp.einsum("bhqd,bhkd->bhqk", q, k) / math.sqrt(head_dim)
    probs = jax.nn.softmax(scores, axis=-1)
    out = jnp.einsum("bhqk,bhkd->bhqd", probs, v)
    out = out.transpose(0, 2, 1, 3).reshape(bsz, seq_len, n_heads * head_dim)
    return out @ wo.T


def make_freqs_cis(max_seq, head_dim, theta):
    """Rotation matrices shaped (max_seq, head_dim//2, 2, 2) as expected by reshape_for_broadcast."""
    inv = 1.0 / (theta ** (jnp.arange(0, head_dim, 2, dtype=jnp.float32) / head_dim))
    ang = jnp.outer(jnp.arange(max_seq, dtype=jnp.float32), inv)  # (max_seq, hd/2)
    cos, sin = jnp.cos(ang), jnp.sin(ang)
    row0 = jnp.stack([cos, -sin], axis=-1)
    row1 = jnp.stack([sin, cos], axis=-1)
    return jnp.stack([row0, row1], axis=-2)  # (max_seq, hd/2, 2, 2)


if __name__ == "__main__":
    # Small shapes, (8,128)-aligned.
    bsz, seq_len = 2, 128
    dim, head_dim = 128, 64
    n_heads, n_kv_heads = 4, 2
    rope_theta = 10000.0
    max_seq = 256

    key = jax.random.PRNGKey(0)
    kx, kq, kk, kv, ko = jax.random.split(key, 5)
    init_std = dim ** -0.5

    x = jax.random.normal(kx, (bsz, seq_len, dim), dtype=jnp.float32)
    wq = jax.random.normal(kq, (n_heads * head_dim, dim), dtype=jnp.float32) * init_std
    wk = jax.random.normal(kk, (n_kv_heads * head_dim, dim), dtype=jnp.float32) * init_std
    wv = jax.random.normal(kv, (n_kv_heads * head_dim, dim), dtype=jnp.float32) * init_std
    wo = jax.random.normal(ko, (dim, n_heads * head_dim), dtype=jnp.float32) * init_std
    freqs_cis = make_freqs_cis(max_seq, head_dim, rope_theta)

    out = attention_forward(
        x, wq, wk, wv, wo, freqs_cis,
        n_heads=n_heads, n_kv_heads=n_kv_heads, head_dim=head_dim,
    )
    out = jax.block_until_ready(out)

    ref = attention_reference(
        x, wq, wk, wv, wo, freqs_cis,
        n_heads=n_heads, n_kv_heads=n_kv_heads, head_dim=head_dim,
    )
    assert out.shape == (bsz, seq_len, dim)
    # bf16 MXU inputs (f32 accumulation) + bf16 exp => bf16-appropriate tolerance.
    max_err = float(jnp.max(jnp.abs(out - ref)))
    ref_mag = float(jnp.max(jnp.abs(ref)))
    assert max_err <= 5e-2 * ref_mag + 1e-3, (max_err, ref_mag)

    print("KERNEL_OK")
</pallas_src>

<mosaic_0001>
module attributes {stable_mosaic.version = 11 : i64} {
  func.func @_qkv_rope_kernel(%arg0: i32, %arg1: i32, %arg2: memref<1x128x128xbf16, #tpu.memory_space<vmem>>, %arg3: memref<128x512xbf16, #tpu.memory_space<vmem>>, %arg4: memref<128x384xf32, #tpu.memory_space<vmem>>, %arg5: memref<128x384xf32, #tpu.memory_space<vmem>>, %arg6: memref<128x384xf32, #tpu.memory_space<vmem>>, %arg7: memref<1x128x256xbf16, #tpu.memory_space<vmem>>, %arg8: memref<1x128x256xbf16, #tpu.memory_space<vmem>>) attributes {dimension_semantics = [#tpu.dimension_semantics<parallel>, #tpu.dimension_semantics<parallel>], iteration_bounds = array<i64: 2, 1>, scalar_prefetch = 0 : i64, scratch_operands = 0 : i64, tpu.core_type = #tpu.core_type<tc>, window_params = [{transform_indices = @transform_0, window_bounds = array<i64: 1, 128, 128>}, {pipeline_mode = #tpu.pipeline_mode<synchronous>, transform_indices = @transform_1, window_bounds = array<i64: 128, 512>}, {transform_indices = @transform_2, window_bounds = array<i64: 128, 384>}, {transform_indices = @transform_3, window_bounds = array<i64: 128, 384>}, {transform_indices = @transform_4, window_bounds = array<i64: 128, 384>}, {transform_indices = @transform_5, window_bounds = array<i64: 1, 128, 256>}, {transform_indices = @transform_6, window_bounds = array<i64: 1, 128, 256>}]} {
    %c0 = arith.constant 0 : index
    %c0_0 = arith.constant 0 : index
    %c0_1 = arith.constant 0 : index
    %0 = vector.load %arg2[%c0, %c0_0, %c0_1] : memref<1x128x128xbf16, #tpu.memory_space<vmem>>, vector<1x128x128xbf16>
    %1 = vector.shape_cast %0 : vector<1x128x128xbf16> to vector<128x128xbf16>
    %c0_2 = arith.constant 0 : index
    %c0_3 = arith.constant 0 : index
    %2 = vector.load %arg3[%c0_2, %c0_3] : memref<128x512xbf16, #tpu.memory_space<vmem>>, vector<128x512xbf16>
    %cst = arith.constant dense<0.000000e+00> : vector<128x512xf32>
    %3 = tpu.matmul %1, %2, %cst {dimension_numbers = #tpu.dot_dimension_numbers<[1], [0], [0], [1], [0, 0, 1, 1], [], []>} : vector<128x128xbf16>, vector<128x512xbf16>, vector<128x512xf32> -> vector<128x512xf32>
    %4 = vector.extract_strided_slice %3 {offsets = [0, 0], sizes = [128, 384], strides = [1, 1]} : vector<128x512xf32> to vector<128x384xf32>
    %5 = vector.extract_strided_slice %4 {offsets = [0, 32], sizes = [128, 352], strides = [1, 1]} : vector<128x384xf32> to vector<128x352xf32>
    %6 = vector.extract_strided_slice %4 {offsets = [0, 0], sizes = [128, 32], strides = [1, 1]} : vector<128x384xf32> to vector<128x32xf32>
    %7 = tpu.concatenate %5, %6 in 1 : vector<128x352xf32>, vector<128x32xf32> -> vector<128x384xf32>
    %8 = vector.extract_strided_slice %4 {offsets = [0, 352], sizes = [128, 32], strides = [1, 1]} : vector<128x384xf32> to vector<128x32xf32>
    %9 = vector.extract_strided_slice %4 {offsets = [0, 0], sizes = [128, 352], strides = [1, 1]} : vector<128x384xf32> to vector<128x352xf32>
    %10 = tpu.concatenate %8, %9 in 1 : vector<128x32xf32>, vector<128x352xf32> -> vector<128x384xf32>
    %c0_4 = arith.constant 0 : index
    %c0_5 = arith.constant 0 : index
    %11 = vector.load %arg4[%c0_4, %c0_5] : memref<128x384xf32, #tpu.memory_space<vmem>>, vector<128x384xf32>
    %12 = arith.mulf %11, %4 : vector<128x384xf32>
    %c0_6 = arith.constant 0 : index
    %c0_7 = arith.constant 0 : index
    %13 = vector.load %arg5[%c0_6, %c0_7] : memref<128x384xf32, #tpu.memory_space<vmem>>, vector<128x384xf32>
    %14 = arith.mulf %13, %7 : vector<128x384xf32>
    %15 = arith.addf %12, %14 : vector<128x384xf32>
    %c0_8 = arith.constant 0 : index
    %c0_9 = arith.constant 0 : index
    %16 = vector.load %arg6[%c0_8, %c0_9] : memref<128x384xf32, #tpu.memory_space<vmem>>, vector<128x384xf32>
    %17 = arith.mulf %16, %10 : vector<128x384xf32>
    %18 = arith.addf %15, %17 : vector<128x384xf32>
    %19 = vector.extract_strided_slice %18 {offsets = [0, 0], sizes = [128, 256], strides = [1, 1]} : vector<128x384xf32> to vector<128x256xf32>
    %20 = arith.truncf %19 : vector<128x256xf32> to vector<128x256xbf16>
    %c0_10 = arith.constant 0 : index
    %c0_11 = arith.constant 0 : index
    %c0_12 = arith.constant 0 : index
    %21 = vector.load %arg7[%c0_10, %c0_11, %c0_12] : memref<1x128x256xbf16, #tpu.memory_space<vmem>>, vector<1x128x256xbf16>
    %22 = vector.shape_cast %21 : vector<1x128x256xbf16> to vector<128x256xbf16>
    %23 = vector.shape_cast %20 : vector<128x256xbf16> to vector<1x128x256xbf16>
    tpu.vector_store %arg7[%c0_10, %c0_11, %c0_12], %23 {strides = array<i32>} : memref<1x128x256xbf16, #tpu.memory_space<vmem>>, vector<1x128x256xbf16>,
    %24 = vector.extract_strided_slice %18 {offsets = [0, 256], sizes = [128, 128], strides = [1, 1]} : vector<128x384xf32> to vector<128x128xf32>
    %25 = arith.truncf %24 : vector<128x128xf32> to vector<128x128xbf16>
    %c0_13 = arith.constant 0 : index
    %c0_14 = arith.constant 0 : index
    %c0_15 = arith.constant 0 : index
    %26 = vector.load %arg8[%c0_13, %c0_14, %c0_15] : memref<1x128x256xbf16, #tpu.memory_space<vmem>>, vector<1x128x128xbf16>
    %27 = vector.shape_cast %26 : vector<1x128x128xbf16> to vector<128x128xbf16>
    %28 = vector.shape_cast %25 : vector<128x128xbf16> to vector<1x128x128xbf16>
    tpu.vector_store %arg8[%c0_13, %c0_14, %c0_15], %28 {strides = array<i32>} : memref<1x128x256xbf16, #tpu.memory_space<vmem>>, vector<1x128x128xbf16>,
    %29 = vector.extract_strided_slice %3 {offsets = [0, 384], sizes = [128, 128], strides = [1, 1]} : vector<128x512xf32> to vector<128x128xf32>
    %30 = arith.truncf %29 : vector<128x128xf32> to vector<128x128xbf16>
    %c0_16 = arith.constant 0 : index
    %c0_17 = arith.constant 0 : index
    %c128 = arith.constant 128 : index
    %31 = vector.load %arg8[%c0_16, %c0_17, %c128] : memref<1x128x256xbf16, #tpu.memory_space<vmem>>, vector<1x128x128xbf16>
    %32 = vector.shape_cast %31 : vector<1x128x128xbf16> to vector<128x128xbf16>
    %33 = vector.shape_cast %30 : vector<128x128xbf16> to vector<1x128x128xbf16>
    tpu.vector_store %arg8[%c0_16, %c0_17, %c128], %33 {strides = array<i32>} : memref<1x128x256xbf16, #tpu.memory_space<vmem>>, vector<1x128x128xbf16>,
    return
  }
  func.func @transform_0(%arg0: i32, %arg1: i32) -> (i32, i32, i32) {
    %c0_i32 = arith.constant 0 : i32
    %c0_i32_0 = arith.constant 0 : i32
    return %arg0, %arg1, %c0_i32 : i32, i32, i32
  }
  func.func @transform_1(%arg0: i32, %arg1: i32) -> (i32, i32) {
    %c0_i32 = arith.constant 0 : i32
    %c0_i32_0 = arith.constant 0 : i32
    %c0_i32_1 = arith.constant 0 : i32
    return %c0_i32, %c0_i32_0 : i32, i32
  }
  func.func @transform_2(%arg0: i32, %arg1: i32) -> (i32, i32) {
    %c0_i32 = arith.constant 0 : i32
    %c0_i32_0 = arith.constant 0 : i32
    return %arg1, %c0_i32 : i32, i32
  }
  func.func @transform_3(%arg0: i32, %arg1: i32) -> (i32, i32) {
    %c0_i32 = arith.constant 0 : i32
    %c0_i32_0 = arith.constant 0 : i32
    return %arg1, %c0_i32 : i32, i32
  }
  func.func @transform_4(%arg0: i32, %arg1: i32) -> (i32, i32) {
    %c0_i32 = arith.constant 0 : i32
    %c0_i32_0 = arith.constant 0 : i32
    return %arg1, %c0_i32 : i32, i32
  }
  func.func @transform_5(%arg0: i32, %arg1: i32) -> (i32, i32, i32) {
    %c0_i32 = arith.constant 0 : i32
    %c0_i32_0 = arith.constant 0 : i32
    return %arg0, %arg1, %c0_i32 : i32, i32, i32
  }
  func.func @transform_6(%arg0: i32, %arg1: i32) -> (i32, i32, i32) {
    %c0_i32 = arith.constant 0 : i32
    %c0_i32_0 = arith.constant 0 : i32
    return %arg0, %arg1, %c0_i32 : i32, i32, i32
  }
}

</mosaic_0001>

<bundles_post_ra>
// kernel: tpu_custom_call.1
= control target key start
LH: loop header
LB: loop body
LE: loop exit
PB: predicated region body
PF: predicated region fallthrough
CT: control target
= control target key end

     0   :  { %s3536_s0 = inlined_call_operand.hbm [shape: bf16[2,128,128], index: 0, kind: input, shape index: {}]   ;;  %s3537_s1 = inlined_call_operand.hbm [shape: bf16[128,512], index: 1, kind: input, shape index: {}]   ;;  %s3538_s2 = inlined_call_operand.hbm [shape: f32[128,384], index: 2, kind: input, shape index: {}]   ;;  %s3539_s3 = inlined_call_operand.hbm [shape: f32[128,384], index: 3, kind: input, shape index: {}]   ;;  %s3540_s4 = inlined_call_operand.hbm [shape: f32[128,384], index: 4, kind: input, shape index: {}]   ;;  %s3541_s5 = inlined_call_operand.hbm [shape: bf16[2,128,256], index: 5, kind: output, shape index: {0}]   ;;  %s3542_s6 = inlined_call_operand.hbm [shape: bf16[2,128,256], index: 6, kind: output, shape index: {1}]  }
   0x1   :  { %3543 = sst [smem:[#allocation19_spill]] %s3537_s1 }
   0x2   :  { %3544 = sst [smem:[#allocation20_spill]] %s3538_s2 }
   0x3   :  { %3545 = sst [smem:[#allocation21_spill]] %s3539_s3 }
   0x4   :  { %3546 = sst [smem:[#allocation22_spill]] %s3540_s4 }
   0x5   :  { %12 = vsyncpa [#allocation3], 0 }
   0x6   :  { %14 = vsyncpa [#allocation3 + $0x1], 0 }
   0x7   :  { %15 = vsyncpa [#allocation6], 0 }
   0x8   :  { %16 = vsyncpa [#allocation9], 0 }
   0x9   :  { %17 = vsyncpa [#allocation4], 0 }
   0xa   :  { %19 = vsyncpa [#allocation4 + $0x1], 0 }
   0xb   :  { %20 = vsyncpa [#allocation13], 0 }
   0xc   :  { %22 = vsyncpa [#allocation13 + $0x1], 0  ;;  %s2682_s21 = smov 0   ;;  %s2684_s22 = smov 0  }
   0xd   :  { %s2686_s23 = smov 0   ;;  %s2688_s24 = smov 0  }
   0xe   :  { %s2690_s25 = smov 0   ;;  %s2692_s26 = smov 0  }
   0xf LB: > { %s2011_s27 = sadd.s32 4294967295, %s2631_s26   ;;  %s2012_s28 = sadd.s32 4294967294, %s2631_s26   ;;  %s2631_s26 = sphi %s2692_s26, %s28_s26   ;;  %s2627_s25 = sphi %s2690_s25, %s3563_s25   ;;  %s2623_s24 = sphi %s2688_s24, %s3562_s24   ;;  %s2619_s23 = sphi %s2686_s23, %s3561_s23   ;;  %s2615_s22 = sphi %s2684_s22, %s3560_s22   ;;  %s2611_s21 = sphi %s2682_s21, %s3559_s21  }
  0x10   : > { %p62_p0 = scmp.ne.s32.totalorder %s2615_s22, %s2611_s21  ;;  %p2716_p1 = scmp.eq.s32.totalorder %s2011_s27, 0 }
  0x11   : > { %p2720_p2 = scmp.eq.s32.totalorder %s2011_s27, 1  ;;  %p193_p3 = scmp.eq.s32.totalorder %s2012_s28, 1 }
  0x12   : > { %p2726_p4 = por %p2716_p1, %p62_p0  ;;  %p2013_p5 = scmp.ge.s32.totalorder %s2631_s26, 1 }
  0x13   : > { %p2731_p6 = por %p193_p3, %p62_p0  ;;  %p228_p7 = scmp.lt.s32.totalorder %s2631_s26, 3 }
  0x14   : > { %s3551_s1 = sld [smem:[#allocation19_spill]]  ;;  %s2633_s13 = smov [#allocation5]  }
  0x15   : > { %p2739_p8 = pnand %p2013_p5, %p228_p7  ;;  %s241_s14 = sshll.u32 %s2633_s13, 4  ;;  %s242_s14 = int_to_ptr.vmem [resolvable:$true] %s241_s14 }
  0x16   : > { %p2018_p11 = scmp.ge.s32.totalorder %s2631_s26, 2  ;;  %s3554_s3 = sld [smem:[#allocation21_spill]] }
  0x17   : > { %p2263_p9 = pneg %p2739_p8  ;;  %s2634_s19 = smov 256  }
  0x18   : > { %s2635_s20 = smov 16   ;;  %s2636_s27 = smov [#allocation8]  }
  0x19   : > { %p2747_p10 = pnand %p2263_p9, %p2716_p1  ;;  %s277_s28 = sshll.u32 %s2636_s27, 4  ;;  %s278_s28 = int_to_ptr.vmem [resolvable:$true] %s277_s28 }
  0x1a   : > { %s239_s11 = sshll.u32 %s3551_s1, 4  ;;  %s3555_s2 = sld [smem:[#allocation20_spill]]  ;;  %s240_s11 = int_to_ptr.hbm [resolvable:$true] %s239_s11 }
  0x1b   : > { %2266 = dma.hbm_to_vmem [thread:$0]  (!%p2747_p10), %s240_s11, 4096, %s242_s14, [#allocation6], %s2634_s19, %s2634_s19, %s2635_s20  }
  0x1c   : > { %s275_s18 = sshll.u32 %s3554_s3, 4  ;;  %s2637_s1 = smov 384   ;;  %s276_s18 = int_to_ptr.hbm [resolvable:$true] %s275_s18 }
  0x1d   : > { %s2638_s16 = smov 24   ;;  %s3556_s4 = sld [smem:[#allocation22_spill]] }
  0x1e   : > { %2272 = dma.hbm_to_vmem [thread:$0]  (!%p2747_p10), %s276_s18, 6144, %s278_s28, [#allocation9], %s2637_s1, %s2637_s1, %s2638_s16  }
  0x1f   : > { %s2639_s19 = smov [#allocation7]   ;;  %s2640_s27 = smov [#allocation10]  }
  0x20   : > { %s257_s13 = sshll.u32 %s3555_s2, 4  ;;  %s259_s20 = sshll.u32 %s2639_s19, 4  ;;  %s258_s13 = int_to_ptr.hbm [resolvable:$true] %s257_s13  ;;  %s260_s20 = int_to_ptr.vmem [resolvable:$true] %s259_s20 }
  0x21   : > { %2269 = dma.hbm_to_vmem [thread:$0]  (!%p2747_p10), %s258_s13, 6144, %s260_s20, [#allocation6], %s2637_s1, %s2637_s1, %s2638_s16  }
  0x22   : > { %s295_s9 = sshll.u32 %s2640_s27, 4  ;;  %s40_s18 = sadd.s32 1, %s2627_s25  ;;  %s296_s9 = int_to_ptr.vmem [resolvable:$true] %s295_s9 }
  0x23   : > { %s293_s17 = sshll.u32 %s3556_s4, 4  ;;  %s49_s28 = sadd.s32 1, %s2619_s23  ;;  %s294_s17 = int_to_ptr.hbm [resolvable:$true] %s293_s17 }
  0x24   : > { %2275 = dma.hbm_to_vmem [thread:$0]  (!%p2747_p10), %s294_s17, 6144, %s296_s9, [#allocation9], %s2637_s1, %s2637_s1, %s2638_s16  }
  0x25   : > { %p42_p12 = scmp.ge.s32.totalorder %s40_s18, 2  ;;  %p56_p13 = scmp.ne.s32.totalorder %s2619_s23, %s2615_s22 }
  0x26   : > { %p57_p0 = scmp.eq.s32.totalorder %s2631_s26, 0  ;;  %p2291_p3 = scmp.lt.s32.totalorder %s2631_s26, 2 }
  0x27   : > { %s3565_s18 = smov (%p42_p12, %s40_s18), 0  ;;  %p2783_p7 = por %p2720_p2, %p56_p13 }
  0x28   : > { %p2777_p5 = por %p57_p0, %p56_p13  ;;  %s44_s1 = ssub.s32 %s2627_s25, %s3565_s18 }
  0x29   : > { %s309_s13 = sand.u32 1, %s2619_s23   ;;  %p47_p9 = scmp.eq.s32.totalorder %s44_s1, 0 }
  0x2a   : > { %s2019_s16 = sshll.u32 %s309_s13, 6  ;;  %s2198_s11 = sshll.u32 %s2627_s25, 6 }
  0x2b   : > { %s2792_s14 = scalar_select %p47_p9, %s2619_s23, %s49_s28  }
  0x2c   : > { %s320_s20 = scalar_lea.hbm %s3536_s0, %s2198_s11  ;;  %s313_s9 = scalar_lea.vmem [#allocation2], %s2019_s16 }
  0x2d   : > { %s321_s27 = sshll.u32 %s320_s20, 4  ;;  %s323_s2 = sshll.u32 %s313_s9, 4  ;;  %s322_s27 = int_to_ptr.hbm [resolvable:$true] %s321_s27  ;;  %s324_s2 = int_to_ptr.vmem [resolvable:$true] %s323_s2 }
  0x2e   : > { %p2277_p2 = pnand %p2291_p3, %p2777_p5  ;;  %s310_s30 = scalar_lea.sflag [#allocation3], %s309_s13 }
  0x2f   : > { %s2641_s3 = smov 64   ;;  %s2642_s4 = smov 4  }
  0x30   : > { %2279 = dma.hbm_to_vmem [thread:$0]  (!%p2277_p2), %s322_s27, 1024, %s324_s2, %s310_s30, %s2641_s3, %s2641_s3, %s2642_s4  }
  0x31   : > { %335 = sbr.rel (%p2739_p8) target bundleno = 607 (0x25f), region = 40  ;;  %s2804_s28 = sand.u32 (!%p2739_p8), 1, %s2615_s22  }
  0x32   : > { %s2023_s1 = sshll.u32 (!%p2739_p8), %s2804_s28, 6  ;;  %s338_s16 = scalar_lea.sflag (!%p2739_p8), [#allocation3], %s2804_s28 }
  0x33   : > { %s2808_s11 = scalar_lea.vmem (!%p2739_p8), [#allocation2], %s2023_s1 }
  0x36   : > { %2590 = dma.done.wait (%p2726_p4), %s338_s16, 1024  }
  0x37   : > { %2592 = vsyncadd (%p2726_p4), %s338_s16, 4294966272 }
  0x38   : > { %2594 = dma.done.wait (%p2716_p1), [#allocation6], 10240  }
  0x39   : > { %2596 = vsyncadd (%p2716_p1), [#allocation6], 4294957056 }
  0x3a   : > { %2598 = dma.done.wait (%p2716_p1), [#allocation9], 12288  }
  0x3b   : > { %2600 = vsyncadd (%p2716_p1), [#allocation9], 4294955008  ;;  %v2176_v0 = vld [vmem:[#allocation5 + $0xe0] sm:$0xf]  ;;  %v2237_v1 = vld [vmem:[#allocation5 + $0xec] sm:$0xf0] }
  0x3c   : > { %v2235_v2 = vld [vmem:[#allocation5 + $0xe4] sm:$0xf]  ;;  %v2177_v3 = vor.u32 %v2237_v1, %v2176_v0  ;;  %v2178_v4 = vld [vmem:[#allocation5 + $0xf0] sm:$0xf0]  ;;  %v2184_v5 = vld [vmem:[#allocation5 + $0xe8] sm:$0xf] }
  0x3d   : > { %v2238_v6 = vld [vmem:[#allocation5 + $0xf4] sm:$0xf0]  ;;  %v2181_v7 = vor.u32 %v2235_v2, %v2178_v4  ;;  %v2160_v9 = vld [vmem:[#allocation5 + $0xc0] sm:$0xf]  ;;  %v2233_v10 = vld [vmem:[#allocation5 + $0xcc] sm:$0xf0] }
  0x3e   : > { %v2185_v8 = vor.u32 %v2238_v6, %v2184_v5  ;;  %v2231_v11 = vld [vmem:[#allocation5 + $0xc4] sm:$0xf]  ;;  %658 = vmatpush.bf16.msra.mxu0 %v2177_v3  ;;  %v2161_v12 = vor.u32 %v2233_v10, %v2160_v9  ;;  %v2162_v13 = vld [vmem:[#allocation5 + $0xd0] sm:$0xf0]  ;;  %v2168_v14 = vld [vmem:[#allocation5 + $0xc8] sm:$0xf] }
  0x3f   : > { %v2234_v15 = vld [vmem:[#allocation5 + $0xd4] sm:$0xf0]  ;;  %707 = vmatpush.bf16.msra.mxu1 %v2181_v7  ;;  %v2165_v16 = vor.u32 %v2231_v11, %v2162_v13  ;;  %v2144_v18 = vld [vmem:[#allocation5 + $0xa0] sm:$0xf]  ;;  %v2229_v19 = vld [vmem:[#allocation5 + $0xac] sm:$0xf0] }
  0x40   : > { %756 = vmatpush.bf16.msra.mxu2 %v2185_v8  ;;  %v2169_v17 = vor.u32 %v2234_v15, %v2168_v14  ;;  %v2227_v20 = vld [vmem:[#allocation5 + $0xa4] sm:$0xf]  ;;  %v2146_v21 = vld [vmem:[#allocation5 + $0xb0] sm:$0xf0]  ;;  %v2152_v22 = vld [vmem:[#allocation5 + $0xa8] sm:$0xf]  ;;  %v2145_v24 = vor.u32 %v2229_v19, %v2144_v18 }
  0x41   : > { %v2230_v23 = vld [vmem:[#allocation5 + $0xb4] sm:$0xf0]  ;;  %v2149_v25 = vor.u32 %v2227_v20, %v2146_v21  ;;  %v2128_v27 = vld [vmem:[#allocation5 + $0x80] sm:$0xf]  ;;  %v2225_v28 = vld [vmem:[#allocation5 + $0x8c] sm:$0xf0] }
  0x42   : > { %659 = vmatpush.bf16.msra.mxu0 %v2161_v12  ;;  %v2153_v26 = vor.u32 %v2230_v23, %v2152_v22  ;;  %v2223_v29 = vld [vmem:[#allocation5 + $0x84] sm:$0xf]  ;;  %v2130_v30 = vld [vmem:[#allocation5 + $0x90] sm:$0xf0]  ;;  %v2136_v31 = vld [vmem:[#allocation5 + $0x88] sm:$0xf]  ;;  %v2129_v33 = vor.u32 %v2225_v28, %v2128_v27 }
  0x43   : > { %708 = vmatpush.bf16.msra.mxu1 %v2165_v16  ;;  %v2226_v32 = vld [vmem:[#allocation5 + $0x94] sm:$0xf0]  ;;  %v2133_v34 = vor.u32 %v2223_v29, %v2130_v30  ;;  %v2112_v36 = vld [vmem:[#allocation5 + $0x60] sm:$0xf]  ;;  %v2221_v37 = vld [vmem:[#allocation5 + $0x6c] sm:$0xf0] }
  0x44   : > { %757 = vmatpush.bf16.msra.mxu2 %v2169_v17  ;;  %v2137_v35 = vor.u32 %v2226_v32, %v2136_v31  ;;  %v2219_v38 = vld [vmem:[#allocation5 + $0x64] sm:$0xf]  ;;  %v2114_v39 = vld [vmem:[#allocation5 + $0x70] sm:$0xf0]  ;;  %v2120_v40 = vld [vmem:[#allocation5 + $0x68] sm:$0xf]  ;;  %v2113_v42 = vor.u32 %v2221_v37, %v2112_v36 }
  0x45   : > { %v2222_v41 = vld [vmem:[#allocation5 + $0x74] sm:$0xf0]  ;;  %v2117_v43 = vor.u32 %v2219_v38, %v2114_v39  ;;  %v2096_v45 = vld [vmem:[#allocation5 + $0x40] sm:$0xf]  ;;  %v2217_v46 = vld [vmem:[#allocation5 + $0x4c] sm:$0xf0] }
  0x46   : > { %660 = vmatpush.bf16.msra.mxu0 %v2145_v24  ;;  %v2121_v44 = vor.u32 %v2222_v41, %v2120_v40  ;;  %v2215_v47 = vld [vmem:[#allocation5 + $0x44] sm:$0xf]  ;;  %v2098_v48 = vld [vmem:[#allocation5 + $0x50] sm:$0xf0]  ;;  %v2104_v49 = vld [vmem:[#allocation5 + $0x48] sm:$0xf]  ;;  %v2097_v51 = vor.u32 %v2217_v46, %v2096_v45 }
  0x47   : > { %709 = vmatpush.bf16.msra.mxu1 %v2149_v25  ;;  %v2218_v50 = vld [vmem:[#allocation5 + $0x54] sm:$0xf0]  ;;  %v2101_v52 = vor.u32 %v2215_v47, %v2098_v48  ;;  %v2080_v54 = vld [vmem:[#allocation5 + $0x20] sm:$0xf]  ;;  %v2213_v55 = vld [vmem:[#allocation5 + $0x2c] sm:$0xf0] }
  0x48   : > { %758 = vmatpush.bf16.msra.mxu2 %v2153_v26  ;;  %v2105_v53 = vor.u32 %v2218_v50, %v2104_v49  ;;  %v2211_v56 = vld [vmem:[#allocation5 + $0x24] sm:$0xf]  ;;  %v2082_v57 = vld [vmem:[#allocation5 + $0x30] sm:$0xf0]  ;;  %v2088_v58 = vld [vmem:[#allocation5 + $0x28] sm:$0xf]  ;;  %v2081_v60 = vor.u32 %v2213_v55, %v2080_v54 }
  0x49   : > { %v2214_v59 = vld [vmem:[#allocation5 + $0x34] sm:$0xf0]  ;;  %v2085_v61 = vor.u32 %v2211_v56, %v2082_v57  ;;  %v2064_v63 = vld [vmem:[#allocation5] sm:$0xf]  ;;  %v2209_v0 = vld [vmem:[#allocation5 + $0xc] sm:$0xf0] }
  0x4a   : > { %661 = vmatpush.bf16.msra.mxu0 %v2129_v33  ;;  %v2089_v62 = vor.u32 %v2214_v59, %v2088_v58  ;;  %v2207_v1 = vld [vmem:[#allocation5 + $0x4] sm:$0xf]  ;;  %v2066_v2 = vld [vmem:[#allocation5 + $0x10] sm:$0xf0]  ;;  %v2072_v3 = vld [vmem:[#allocation5 + $0x8] sm:$0xf]  ;;  %v2065_v5 = vor.u32 %v2209_v0, %v2064_v63 }
  0x4b   : > { %710 = vmatpush.bf16.msra.mxu1 %v2133_v34  ;;  %v2210_v4 = vld [vmem:[#allocation5 + $0x14] sm:$0xf0]  ;;  %v2069_v6 = vor.u32 %v2207_v1, %v2066_v2  ;;  %v2823_v8 = vld [vmem:[%s2808_s11] sm:$0xff]  ;;  %v2829_v9 = vld [vmem:[%s2808_s11 + $0x8] sm:$0xff]  ;;  %s2643_s2 = smov 32   ;;  %s2644_s3 = smov 96  }
  0x4c   : > { %759 = vmatpush.bf16.msra.mxu2 %v2137_v35  ;;  %v2073_v7 = vor.u32 %v2210_v4, %v2072_v3  ;;  %v2835_v10 = vld [vmem:[%s2808_s11 + $0x10] sm:$0xff]  ;;  %v2841_v11 = vld [vmem:[%s2808_s11 + $0x18] sm:$0xff]  ;;  %v2847_v12 = vld [vmem:[%s2808_s11 + $0x20] sm:$0xff]  ;;  %vm998_vm0 = vcmask 785408   ;;  %vm1223_vm1 = vcmask 261120   ;;  %s2028_s4 = sshll.u32 %s2804_s28, 7 }
  0x4d   : > { %v2853_v13 = vld [vmem:[%s2808_s11 + $0x28] sm:$0xff]  ;;  %v2897_v21 = vld [vmem:[%s2808_s11 + $0x30] sm:$0xff]  ;;  %v2186_v25 = vld [vmem:[#allocation5 + $0xf8] sm:$0xf0]  ;;  %s3056_s29 = scalar_lea.vmem [#allocation11], %s2028_s4  ;;  %s3059_s7 = scalar_lea.vmem [#allocation12], %s2028_s4 }
  0x4e   : > { %662 = vmatpush.bf16.msra.mxu0 %v2113_v42  ;;  %v2236_v24 = vld [vmem:[#allocation5 + $0xec] sm:$0xf]  ;;  %v2170_v30 = vld [vmem:[#allocation5 + $0xd8] sm:$0xf0]  ;;  %s2239_s12 = sshll.u32 %s2623_s24, 7  ;;  %s1821_s27 = sshll.u32 %s3056_s29, 4  ;;  %s1822_s27 = int_to_ptr.vmem [resolvable:$true] %s1821_s27 }
  0x4f   : > { %711 = vmatpush.bf16.msra.mxu1 %v2117_v43  ;;  %v2189_v26 = vor.u32 %v2236_v24, %v2186_v25  ;;  %v2232_v29 = vld [vmem:[#allocation5 + $0xcc] sm:$0xf]  ;;  %v2154_v33 = vld [vmem:[#allocation5 + $0xb8] sm:$0xf0]  ;;  %s1820_s13 = scalar_lea.hbm %s3541_s5, %s2239_s12  ;;  %s1840_s20 = scalar_lea.hbm %s3542_s6, %s2239_s12 }
  0x50   : > { %760 = vmatpush.bf16.msra.mxu2 %v2121_v44  ;;  %v2173_v31 = vor.u32 %v2232_v29, %v2170_v30  ;;  %v2228_v32 = vld [vmem:[#allocation5 + $0xac] sm:$0xf]  ;;  %v2138_v37 = vld [vmem:[#allocation5 + $0x98] sm:$0xf0]  ;;  %v1416_v30 = vld [vmem:[#allocation8] sm:$0xff]  ;;  %s1823_s9 = sshll.u32 %s1820_s13, 4  ;;  %s1824_s9 = int_to_ptr.hbm [resolvable:$true] %s1823_s9 }
  0x51   : > { %805 = vmatpush.bf16.msra.mxu3 %v2189_v26  ;;  %v2157_v34 = vor.u32 %v2228_v32, %v2154_v33  ;;  %v2224_v36 = vld [vmem:[#allocation5 + $0x8c] sm:$0xf]  ;;  %v2937_v39 = vld [vmem:[%s2808_s11 + $0x38] sm:$0xff]  ;;  %v1418_v26 = vld [vmem:[#allocation8 + $0x10] sm:$0xff]  ;;  %s1843_s30 = sshll.u32 %s1840_s20, 4  ;;  %s1841_s1 = sshll.u32 %s3059_s7, 4  ;;  %s3482_s30 = int_to_ptr.hbm [resolvable:$true] %s1843_s30  ;;  %s3485_s1 = int_to_ptr.vmem [resolvable:$true] %s1841_s1 }
  0x52   : > { %663 = vmatpush.bf16.msra.mxu0 %v2097_v51  ;;  %v2141_v38 = vor.u32 %v2224_v36, %v2138_v37  ;;  %v2220_v40 = vld [vmem:[#allocation5 + $0x6c] sm:$0xf]  ;;  %v2122_v41 = vld [vmem:[#allocation5 + $0x78] sm:$0xf0]  ;;  %v1322_v37 = vld [vmem:[#allocation7 + $0x10] sm:$0xff]  ;;  %s1801_s16 = scalar_lea.sflag [#allocation4], %s2804_s28 }
  0x53   : > { %712 = vmatpush.bf16.msra.mxu1 %v2101_v52  ;;  %v2125_v42 = vor.u32 %v2220_v40, %v2122_v41  ;;  %v2216_v46 = vld [vmem:[#allocation5 + $0x4c] sm:$0xf]  ;;  %v2106_v47 = vld [vmem:[#allocation5 + $0x58] sm:$0xf0]  ;;  %s2523_s11 = sshra.s32 %s1824_s9, 4  ;;  %s2529_s12 = scalar_lea.hbm %s3541_s5, 256  ;;  %s2524_s11 = int_to_ptr.hbm [resolvable:$true] %s2523_s11 }
  0x54   : > { %761 = vmatpush.bf16.msra.mxu2 %v2105_v53  ;;  %v2109_v48 = vor.u32 %v2216_v46, %v2106_v47  ;;  %v2212_v49 = vld [vmem:[#allocation5 + $0x2c] sm:$0xf]  ;;  %v2090_v50 = vld [vmem:[#allocation5 + $0x38] sm:$0xf0]  ;;  %v1562_v46 = vld [vmem:[#allocation10 + $0x10] sm:$0xff]  ;;  %p2530_p10 = scmp.lt.s32.totalorder %s2524_s11, %s3541_s5 }
  0x55   : > { %806 = vmatpush.bf16.msra.mxu3 %v2173_v31  ;;  %v2093_v51 = vor.u32 %v2212_v49, %v2090_v50  ;;  %v2208_v52 = vld [vmem:[#allocation5 + $0xc] sm:$0xf]  ;;  %v2074_v53 = vld [vmem:[#allocation5 + $0x18] sm:$0xf0] }
  0x56   : > { %664 = vmatpush.bf16.msra.mxu0 %v2081_v60  ;;  %v2077_v55 = vor.u32 %v2208_v52, %v2074_v53  ;;  %v1321_v25 = vld [vmem:[#allocation7 + $0x8] sm:$0xff] }
  0x57   : > { %713 = vmatpush.bf16.msra.mxu1 %v2085_v61 }
  0x58   : > { %762 = vmatpush.bf16.msra.mxu2 %v2089_v62 }
  0x59   : > { %807 = vmatpush.bf16.msra.mxu3 %v2157_v34  ;;  %v1320_v34 = vld [vmem:[#allocation7] sm:$0xff] }
  0x5a   : > { %665 = vmatpush.bf16.msra.mxu0 %v2065_v5 }
  0x5b   : > { %714 = vmatpush.bf16.msra.mxu1 %v2069_v6 }
  0x5c   : > { %763 = vmatpush.bf16.msra.mxu2 %v2073_v7 }
  0x5d   : > { %666 = vmatmul.bf16.vlgmr.msra.gmra.mxu0 %v2823_v8  ;;  %808 = vmatpush.bf16.msra.mxu3 %v2141_v38  ;;  %v1561_v38 = vld [vmem:[#allocation10 + $0x8] sm:$0xff] }
  0x5e   : > { %715 = vmatmul.bf16.vlgmr.msra.gmra.mxu1 %v2823_v8 }
  0x5f   : > { %764 = vmatmul.bf16.vlgmr.msra.gmra.mxu2 %v2823_v8 }
  0x61   : > { %809 = vmatpush.bf16.msra.mxu3 %v2125_v42 }
  0x65   : > { %810 = vmatpush.bf16.msra.mxu3 %v2109_v48 }
  0x69   : > { %811 = vmatpush.bf16.msra.mxu3 %v2093_v51 }
  0x6d   : > { %671 = vmatmul.bf16.gmra.mxu0 %v2829_v9  ;;  %812 = vmatpush.bf16.msra.mxu3 %v2077_v55 }
  0x6e   : > { %720 = vmatmul.bf16.gmra.mxu1 %v2829_v9 }
  0x6f   : > { %769 = vmatmul.bf16.gmra.mxu2 %v2829_v9 }
  0x70   : > { %813 = vmatmul.bf16.vlgmr.msra.gmra.mxu3 %v2823_v8 }
  0x7d   : > { %676 = vmatmul.bf16.gmra.mxu0 %v2835_v10 }
  0x7e   : > { %725 = vmatmul.bf16.gmra.mxu1 %v2835_v10 }
  0x7f   : > { %774 = vmatmul.bf16.gmra.mxu2 %v2835_v10 }
  0x80   : > { %818 = vmatmul.bf16.gmra.mxu3 %v2829_v9  ;;  %v1417_v9 = vld [vmem:[#allocation8 + $0x8] sm:$0xff] }
  0x8d   : > { %681 = vmatmul.bf16.gmra.mxu0 %v2841_v11 }
  0x8e   : > { %730 = vmatmul.bf16.gmra.mxu1 %v2841_v11 }
  0x8f   : > { %779 = vmatmul.bf16.gmra.mxu2 %v2841_v11 }
  0x90   : > { %823 = vmatmul.bf16.gmra.mxu3 %v2835_v10 }
  0x9d   : > { %686 = vmatmul.bf16.gmra.mxu0 %v2847_v12 }
  0x9e   : > { %735 = vmatmul.bf16.gmra.mxu1 %v2847_v12 }
  0x9f   : > { %784 = vmatmul.bf16.gmra.mxu2 %v2847_v12 }
  0xa0   : > { %828 = vmatmul.bf16.gmra.mxu3 %v2841_v11  ;;  %v1560_v11 = vld [vmem:[#allocation10] sm:$0xff] }
  0xad   : > { %691 = vmatmul.bf16.gmra.mxu0 %v2853_v13 }
  0xae   : > { %740 = vmatmul.bf16.gmra.mxu1 %v2853_v13 }
  0xaf   : > { %789 = vmatmul.bf16.gmra.mxu2 %v2853_v13 }
  0xb0   : > { %833 = vmatmul.bf16.gmra.mxu3 %v2847_v12 }
  0xbd   : > { %696 = vmatmul.bf16.gmra.mxu0 %v2897_v21 }
  0xbe   : > { %745 = vmatmul.bf16.gmra.mxu1 %v2897_v21 }
  0xbf   : > { %794 = vmatmul.bf16.gmra.mxu2 %v2897_v21 }
  0xc0   : > { %838 = vmatmul.bf16.gmra.mxu3 %v2853_v13 }
  0xcd   : > { %701 = vmatmul.bf16.gmra.mxu0 %v2937_v39 }
  0xce   : > { %750 = vmatmul.bf16.gmra.mxu1 %v2937_v39 }
  0xcf   : > { %799 = vmatmul.bf16.gmra.mxu2 %v2937_v39 }
  0xd0   : > { %843 = vmatmul.bf16.gmra.mxu3 %v2897_v21 }
  0xda   : > { %v2858_v14 = vpop.f32.mrf.mxu0 }
  0xdb   : > { %v2860_v15 = vpop.f32.mrf.mxu1  ;;  %1159 = vrot.lane.b32.xlu1 %v2858_v14, %s2643_s2  ;;  %902 = vrot.lane.b32.xlu0 %v2858_v14, %s2644_s3 }
  0xdc   : > { %1161 = vrot.lane.b32.xlu2 %v2860_v15, %s2643_s2  ;;  %v1369_v36 = vmul.f32 %v1321_v25, %v2860_v15 }
  0xe0   : > { %848 = vmatmul.bf16.gmra.mxu3 %v2937_v39 }
  0xe2   : > { %v2868_v16 = vpop.f32.mrf.mxu2  ;;  %v2878_v18 = vpop.f32.mrf.mxu0 }
  0xe3   : > { %v2870_v17 = vpop.f32.mrf.mxu1  ;;  %906 = vrot.lane.b32.xlu1 %v2868_v16, %s2644_s3  ;;  %904 = vrot.lane.b32.xlu0 %v2860_v15, %s2644_s3  ;;  %v1368_v15 = vmul.f32 %v1320_v34, %v2858_v14  ;;  %v1370_v47 = vmul.f32 %v1322_v37, %v2868_v16  ;;  %v1419_v34 = vld [vmem:[#allocation8 + $0x18] sm:$0xff] }
  0xe4   : > { %910 = vrot.lane.b32.xlu2 %v2870_v17, %s2644_s3 }
  0xea   : > { %v2880_v19 = vpop.f32.mrf.mxu2  ;;  %v2888_v20 = vpop.f32.mrf.mxu0 }
  0xeb   : > { %1111 = vrot.lane.b32.xlu0 %v2868_v16, %s2643_s2  ;;  %908 = vrot.lane.b32.xlu1 %v2878_v18, %s2644_s3  ;;  %v2910_v23 = vpop.f32.mrf.mxu1 }
  0xec   : > { %912 = vrot.lane.b32.xlu2 %v2880_v19, %s2644_s3 }
  0xf2   : > { %v2902_v22 = vpop.f32.mrf.mxu2  ;;  %v2918_v27 = vpop.f32.mrf.mxu0 }
  0xf3   : > { %1163 = vrot.lane.b32.xlu0 %v2878_v18, %s2643_s2  ;;  %1165 = vrot.lane.b32.xlu1 %v2870_v17, %s2643_s2  ;;  %v2920_v28 = vpop.f32.mrf.mxu1 }
  0xf4   : > { %1167 = vrot.lane.b32.xlu2 %v2888_v20, %s2643_s2 }
  0xfa   : > { %v2928_v35 = vpop.f32.mrf.mxu2  ;;  %v2942_v43 = vpop.f32.mrf.mxu0 }
  0xfb   : > { %1113 = vrot.lane.b32.xlu1 %v2880_v19, %s2643_s2  ;;  %914 = vrot.lane.b32.xlu0 %v2888_v20, %s2644_s3  ;;  %v2946_v45 = vpop.f32.mrf.mxu1 }
  0xfc   : > { %918 = vrot.lane.b32.xlu2 %v2902_v22, %s2644_s3 }
 0x102   : > { %v2944_v44 = vpop.f32.mrf.mxu2  ;;  %v2954_v54 = vpop.f32.mrf.mxu0 }
 0x103   : > { %916 = vrot.lane.b32.xlu1 %v2910_v23, %s2644_s3  ;;  %1169 = vrot.lane.b32.xlu0 %v2910_v23, %s2643_s2  ;;  %v2971_v57 = vpop.f32.mrf.mxu1 }
 0x104   : > { %1115 = vrot.lane.b32.xlu2 %v2902_v22, %s2643_s2 }
 0x10a   : > { %v2963_v56 = vpop.f32.mrf.mxu2  ;;  %v2980_v59 = vpop.f32.mrf.mxu0 }
 0x10b   : > { %922 = vrot.lane.b32.xlu1 %v2920_v28, %s2644_s3  ;;  %920 = vrot.lane.b32.xlu0 %v2918_v27, %s2644_s3  ;;  %v2982_v60 = vpop.f32.mrf.mxu1 }
 0x10c   : > { %1173 = vrot.lane.b32.xlu2 %v2920_v28, %s2643_s2 }
 0x112   : > { %v2992_v62 = vpop.f32.mrf.mxu2  ;;  %v3003_v0 = vpop.f32.mrf.mxu0 }
 0x113   : > { %1171 = vrot.lane.b32.xlu1 %v2918_v27, %s2643_s2  ;;  %1117 = vrot.lane.b32.xlu0 %v2928_v35, %s2643_s2  ;;  %v3005_v1 = vpop.f32.mrf.mxu1 }
 0x114   : > { %924 = vrot.lane.b32.xlu2 %v2928_v35, %s2644_s3 }
 0x11a   : > { %v3007_v2 = vpop.f32.mrf.mxu2  ;;  %v3017_v6 = vpop.f32.mrf.mxu0 }
 0x11b   : > { %928 = vrot.lane.b32.xlu1 %v2946_v45, %s2644_s3  ;;  %926 = vrot.lane.b32.xlu0 %v2942_v43, %s2644_s3 }
 0x11c   : > { %930 = vrot.lane.b32.xlu2 %v2944_v44, %s2644_s3 }
 0x122   : > { %v3031_v33 = vpop.f32.mrf.mxu2 }
 0x123   : > { %1177 = vrot.lane.b32.xlu1 %v2946_v45, %s2643_s2  ;;  %1175 = vrot.lane.b32.xlu0 %v2942_v43, %s2643_s2 }
 0x124   : > { %1179 = vrot.lane.b32.xlu2 %v2954_v54, %s2643_s2 }
 0x12b   : > { %1119 = vrot.lane.b32.xlu1 %v2944_v44, %s2643_s2  ;;  %932 = vrot.lane.b32.xlu0 %v2954_v54, %s2644_s3 }
 0x12c   : > { %936 = vrot.lane.b32.xlu2 %v2963_v56, %s2644_s3 }
 0x133   : > { %934 = vrot.lane.b32.xlu1 %v2971_v57, %s2644_s3  ;;  %1181 = vrot.lane.b32.xlu0 %v2971_v57, %s2643_s2 }
 0x134   : > { %1121 = vrot.lane.b32.xlu2 %v2963_v56, %s2643_s2 }
 0x136   : > { %v1162_v58 = vpop.permute.xlu2 %1161 }
 0x13b   : > { %940 = vrot.lane.b32.xlu1 %v2982_v60, %s2644_s3  ;;  %938 = vrot.lane.b32.xlu0 %v2980_v59, %s2644_s3 }
 0x13c   : > { %1185 = vrot.lane.b32.xlu2 %v2982_v60, %s2643_s2 }
 0x13e   : > { %v2990_v61 = vpop.permute.xlu2 %910 }
 0x143   : > { %1183 = vrot.lane.b32.xlu1 %v2980_v59, %s2643_s2  ;;  %1123 = vrot.lane.b32.xlu0 %v2992_v62, %s2643_s2 }
 0x144   : > { %942 = vrot.lane.b32.xlu2 %v2992_v62, %s2644_s3 }
 0x146   : > { %v3000_v63 = vpop.permute.xlu2 %912 }
 0x14b   : > { %946 = vrot.lane.b32.xlu1 %v3005_v1, %s2644_s3  ;;  %944 = vrot.lane.b32.xlu0 %v3003_v0, %s2644_s3 }
 0x14c   : > { %948 = vrot.lane.b32.xlu2 %v3007_v2, %s2644_s3 }
 0x14d   : > { %v1160_v3 = vpop.permute.xlu1 %1159  ;;  %v903_v4 = vpop.permute.xlu0 %902 }
 0x14e   : > { %v3015_v5 = vpop.permute.xlu2 %1167  ;;  %v1224_v40 = vsel %vm1223_vm1, %v1160_v3, %v1162_v58 }
 0x14f   : > { %v1609_v51 = vmul.f32 %v1561_v38, %v1224_v40  ;;  %v1324_v40 = vld [vmem:[#allocation7 + $0x20] sm:$0xff] }
 0x150   : > { %v1372_v12 = vmul.f32 %v1324_v40, %v2870_v17 }
 0x153   : > { %1189 = vrot.lane.b32.xlu1 %v3005_v1, %s2643_s2  ;;  %1187 = vrot.lane.b32.xlu0 %v3003_v0, %s2643_s2 }
 0x154   : > { %1191 = vrot.lane.b32.xlu2 %v3017_v6, %s2643_s2 }
 0x155   : > { %v907_v7 = vpop.permute.xlu1 %906  ;;  %v905_v8 = vpop.permute.xlu0 %904 }
 0x156   : > { %v1000_v10 = vsel %vm998_vm0, %v905_v8, %v907_v7  ;;  %v3026_v24 = vpop.permute.xlu2 %918  ;;  %v1095_v29 = vsel %vm998_vm0, %v907_v7, %v903_v4  ;;  %v999_v31 = vsel %vm998_vm0, %v903_v4, %v905_v8 }
 0x157   : > { %v1465_v32 = vmul.f32 %v1417_v9, %v1000_v10  ;;  %v1466_v41 = vmul.f32 %v1418_v26, %v1095_v29  ;;  %v1464_v42 = vmul.f32 %v1416_v30, %v999_v31  ;;  %v3048_v10 = vpop.f32.mrf.mxu1  ;;  %v1420_v31 = vld [vmem:[#allocation8 + $0x20] sm:$0xff] }
 0x159   : > { %v1513_v48 = vadd.f32 %v1465_v32, %v1369_v36  ;;  %v1514_v4 = vadd.f32 %v1466_v41, %v1370_v47  ;;  %v1512_v7 = vadd.f32 %v1464_v42, %v1368_v15  ;;  %v1002_v32 = vsel %vm998_vm0, %v2990_v61, %v3000_v63  ;;  %v1421_v36 = vld [vmem:[#allocation8 + $0x28] sm:$0xff]  ;;  %v1323_v41 = vld [vmem:[#allocation7 + $0x18] sm:$0xff]  ;;  %v1564_v47 = vld [vmem:[#allocation10 + $0x20] sm:$0xff] }
 0x15a   : > { %v1325_v42 = vld [vmem:[#allocation7 + $0x28] sm:$0xff] }
 0x15b   : > { %1125 = vrot.lane.b32.xlu1 %v3007_v2, %s2643_s2  ;;  %950 = vrot.lane.b32.xlu0 %v3017_v6, %s2644_s3  ;;  %v1657_v14 = vadd.f32 %v1609_v51, %v1513_v48 }
 0x15c   : > { %954 = vrot.lane.b32.xlu2 %v3031_v33, %s2644_s3 }
 0x15d   : > { %v1112_v49 = vpop.permute.xlu0 %1111  ;;  %v909_v50 = vpop.permute.xlu1 %908 }
 0x15e   : > { %v1225_v52 = vsel %vm1223_vm1, %v1162_v58, %v1112_v49  ;;  %v1304_v53 = vsel %vm1223_vm1, %v1112_v49, %v1160_v3  ;;  %v3045_v55 = vpop.permute.xlu2 %1115  ;;  %v1001_v37 = vsel %vm998_vm0, %v909_v50, %v2990_v61  ;;  %v1096_v38 = vsel %vm998_vm0, %v3000_v63, %v909_v50  ;;  %v1563_v61 = vld [vmem:[#allocation10 + $0x18] sm:$0xff]  ;;  %v1565_v63 = vld [vmem:[#allocation10 + $0x28] sm:$0xff] }
 0x15f   : > { %v1608_v8 = vmul.f32 %v1560_v11, %v1304_v53  ;;  %v1610_v9 = vmul.f32 %v1562_v46, %v1225_v52  ;;  %v1468_v11 = vmul.f32 %v1420_v31, %v1002_v32  ;;  %v3072_v46 = vpop.f32.mrf.mxu0  ;;  %v3074_v15 = vpop.f32.mrf.mxu1  ;;  %v1467_v49 = vmul.f32 %v1419_v34, %v1001_v37  ;;  %v1424_v31 = vld [vmem:[#allocation8 + $0x40] sm:$0xff]  ;;  %v1326_v37 = vld [vmem:[#allocation7 + $0x30] sm:$0xff] }
 0x160   : > { %v1469_v51 = vmul.f32 %v1421_v36, %v1096_v38  ;;  %v1371_v50 = vmul.f32 %v1323_v41, %v2878_v18  ;;  %v1373_v52 = vmul.f32 %v1325_v42, %v2880_v19  ;;  %v3092_v19 = vpop.f32.mrf.mxu2  ;;  %v1327_v38 = vld [vmem:[#allocation7 + $0x38] sm:$0xff]  ;;  %v1422_v42 = vld [vmem:[#allocation8 + $0x30] sm:$0xff] }
 0x161   : > { %v1656_v25 = vadd.f32 %v1608_v8, %v1512_v7  ;;  %v1658_v16 = vadd.f32 %v1610_v9, %v1514_v4  ;;  %v1516_v8 = vadd.f32 %v1468_v11, %v1372_v12  ;;  %v1423_v11 = vld [vmem:[#allocation8 + $0x38] sm:$0xff]  ;;  %v1566_v12 = vld [vmem:[#allocation10 + $0x30] sm:$0xff] }
 0x162   : > { %v1515_v17 = vadd.f32 %v1467_v49, %v1371_v50  ;;  %v1375_v49 = vmul.f32 %v1327_v38, %v2910_v23  ;;  %v1426_v38 = vld [vmem:[#allocation8 + $0x50] sm:$0xff] }
 0x163   : > { %v1704_v26 = vpack.c.bf16 %v1657_v14, %v1656_v25  ;;  %v1736_v29 = vpack.c.bf16 %v1658_v16, %v1658_v16  ;;  %952 = vrot.lane.b32.xlu1 %v3048_v10, %s2644_s3  ;;  %1193 = vrot.lane.b32.xlu0 %v3048_v10, %s2643_s2  ;;  %v1517_v16 = vadd.f32 %v1469_v51, %v1373_v52 }
 0x164   : > { %1127 = vrot.lane.b32.xlu2 %v3031_v33, %s2643_s2 }
 0x165   : > { %1720 = vst [vmem:[%s3056_s29] sm:$0xff] %v1704_v26  ;;  %v1164_v58 = vpop.permute.xlu0 %1163  ;;  %v1166_v3 = vpop.permute.xlu1 %1165 }
 0x166   : > { %1752 = vst [vmem:[%s3059_s7] sm:$0xf] %v1736_v29  ;;  %v3062_v30 = vpop.permute.xlu2 %1173  ;;  %v1226_v48 = vsel %vm1223_vm1, %v1164_v58, %v1166_v3 }
 0x167   : > { %v1612_v53 = vmul.f32 %v1564_v47, %v1226_v48  ;;  %v1568_v47 = vld [vmem:[#allocation10 + $0x40] sm:$0xff]  ;;  %v1374_v48 = vmul.f32 %v1326_v37, %v2888_v20  ;;  %v1567_v20 = vld [vmem:[#allocation10 + $0x38] sm:$0xff] }
 0x169   : > { %v1660_v32 = vadd.f32 %v1612_v53, %v1516_v8 }
 0x16b   : > { %958 = vrot.lane.b32.xlu1 %v3074_v15, %s2644_s3  ;;  %956 = vrot.lane.b32.xlu0 %v3072_v46, %s2644_s3 }
 0x16c   : > { %1197 = vrot.lane.b32.xlu2 %v3074_v15, %s2643_s2 }
 0x16d   : > { %v1114_v4 = vpop.permute.xlu1 %1113  ;;  %v915_v7 = vpop.permute.xlu0 %914 }
 0x16e   : > { %v1227_v9 = vsel %vm1223_vm1, %v1166_v3, %v1114_v4  ;;  %v1305_v14 = vsel %vm1223_vm1, %v1114_v4, %v1164_v58  ;;  %v3088_v25 = vpop.permute.xlu2 %924  ;;  %v1097_v18 = vsel %vm998_vm0, %v3026_v24, %v915_v7  ;;  %v1328_v3 = vld [vmem:[#allocation7 + $0x40] sm:$0xff] }
 0x16f   : > { %v1611_v26 = vmul.f32 %v1563_v61, %v1305_v14  ;;  %v1613_v29 = vmul.f32 %v1565_v63, %v1227_v9  ;;  %v1472_v41 = vmul.f32 %v1424_v31, %v1097_v18  ;;  %v1376_v51 = vmul.f32 %v1328_v3, %v2902_v22  ;;  %v3120_v18 = vpop.f32.mrf.mxu2 }
 0x170   : > { %v1306_v61 = vsel %vm1223_vm1, %v3045_v55, %v3015_v5 }
 0x171   : > { %v1659_v34 = vadd.f32 %v1611_v26, %v1515_v17  ;;  %v1661_v36 = vadd.f32 %v1613_v29, %v1517_v16  ;;  %v1520_v8 = vadd.f32 %v1472_v41, %v1376_v51  ;;  %v1614_v16 = vmul.f32 %v1566_v12, %v1306_v61  ;;  %v1331_v51 = vld [vmem:[#allocation7 + $0x58] sm:$0xff] }
 0x173   : > { %v1705_v58 = vpack.c.bf16 %v1660_v32, %v1659_v34  ;;  %v1737_v40 = vpack.c.bf16 %v1661_v36, %v1661_v36  ;;  %1195 = vrot.lane.b32.xlu1 %v3072_v46, %s2643_s2  ;;  %1129 = vrot.lane.b32.xlu0 %v3092_v19, %s2643_s2 }
 0x174   : > { %960 = vrot.lane.b32.xlu2 %v3092_v19, %s2644_s3 }
 0x175   : > { %1721 = vst [vmem:[%s3056_s29 + $0x8] sm:$0xff] %v1705_v58  ;;  %v917_v63 = vpop.permute.xlu1 %916  ;;  %v1170_v50 = vpop.permute.xlu0 %1169 }
 0x176   : > { %1753 = vst [vmem:[%s3059_s7 + $0x8] sm:$0xf] %v1737_v40  ;;  %v1003_v52 = vsel %vm998_vm0, %v915_v7, %v917_v63  ;;  %v1004_v53 = vsel %vm998_vm0, %v917_v63, %v3026_v24  ;;  %v3111_v4 = vpop.permute.xlu2 %930  ;;  %v1228_v22 = vsel %vm1223_vm1, %v3015_v5, %v1170_v50  ;;  %v1229_v23 = vsel %vm1223_vm1, %v1170_v50, %v3045_v55  ;;  %v3118_v7 = vpop.f32.mrf.mxu0  ;;  %v1425_v40 = vld [vmem:[#allocation8 + $0x48] sm:$0xff] }
 0x177   : > { %v1470_v9 = vmul.f32 %v1422_v42, %v1003_v52  ;;  %v1471_v14 = vmul.f32 %v1423_v11, %v1004_v53  ;;  %v1616_v17 = vmul.f32 %v1568_v47, %v1229_v23  ;;  %v1615_v29 = vmul.f32 %v1567_v20, %v1228_v22  ;;  %v3122_v5 = vpop.f32.mrf.mxu1  ;;  %v1330_v42 = vld [vmem:[#allocation7 + $0x50] sm:$0xff]  ;;  %v1427_v11 = vld [vmem:[#allocation8 + $0x58] sm:$0xff]  ;;  %v1569_v53 = vld [vmem:[#allocation10 + $0x48] sm:$0xff] }
 0x178   : > { %v1378_v61 = vmul.f32 %v1330_v42, %v2920_v28  ;;  %v1571_v20 = vld [vmem:[#allocation10 + $0x58] sm:$0xff]  ;;  %v1379_v22 = vmul.f32 %v1331_v51, %v2928_v35  ;;  %v1429_v42 = vld [vmem:[#allocation8 + $0x68] sm:$0xff] }
 0x179   : > { %v1518_v24 = vadd.f32 %v1470_v9, %v1374_v48  ;;  %v1519_v26 = vadd.f32 %v1471_v14, %v1375_v49  ;;  %v1664_v31 = vadd.f32 %v1616_v17, %v1520_v8  ;;  %v1329_v48 = vld [vmem:[#allocation7 + $0x48] sm:$0xff] }
 0x17a   : > { %v1377_v52 = vmul.f32 %v1329_v48, %v2918_v27  ;;  %v1430_v48 = vld [vmem:[#allocation8 + $0x70] sm:$0xff] }
 0x17b   : > { %v1662_v55 = vadd.f32 %v1614_v16, %v1518_v24  ;;  %v1663_v32 = vadd.f32 %v1615_v29, %v1519_v26  ;;  %v1738_v34 = vpack.c.bf16 %v1664_v31, %v1664_v31  ;;  %964 = vrot.lane.b32.xlu1 %v3122_v5, %s2644_s3  ;;  %962 = vrot.lane.b32.xlu0 %v3118_v7, %s2644_s3 }
 0x17c   : > { %966 = vrot.lane.b32.xlu2 %v3120_v18, %s2644_s3 }
 0x17d   : > { %v1706_v13 = vpack.c.bf16 %v1663_v32, %v1662_v55  ;;  %1754 = vst [vmem:[%s3059_s7 + $0x10] sm:$0xf] %v1738_v34  ;;  %v923_v36 = vpop.permute.xlu1 %922  ;;  %v921_v37 = vpop.permute.xlu0 %920 }
 0x17e   : > { %v1006_v3 = vsel %vm998_vm0, %v923_v36, %v3088_v25  ;;  %v3133_v58 = vpop.permute.xlu2 %1179  ;;  %v1005_v41 = vsel %vm998_vm0, %v921_v37, %v923_v36  ;;  %v1098_v47 = vsel %vm998_vm0, %v3088_v25, %v921_v37  ;;  %v3140_v63 = vpop.f32.mrf.mxu0  ;;  %v1570_v25 = vld [vmem:[#allocation10 + $0x50] sm:$0xff] }
 0x17f   : > { %1722 = vst [vmem:[%s3056_s29 + $0x10] sm:$0xff] %v1706_v13  ;;  %v1474_v49 = vmul.f32 %v1426_v38, %v1006_v3  ;;  %v1473_v12 = vmul.f32 %v1425_v40, %v1005_v41  ;;  %v1475_v50 = vmul.f32 %v1427_v11, %v1098_v47  ;;  %v3158_v34 = vpop.f32.mrf.mxu2  ;;  %v3170_v38 = vpop.f32.mrf.mxu1  ;;  %v1428_v47 = vld [vmem:[#allocation8 + $0x60] sm:$0xff] }
 0x181   : > { %v1522_v28 = vadd.f32 %v1474_v49, %v1378_v61  ;;  %v1521_v9 = vadd.f32 %v1473_v12, %v1377_v52  ;;  %v1523_v24 = vadd.f32 %v1475_v50, %v1379_v22  ;;  %v1333_v12 = vld [vmem:[#allocation7 + $0x68] sm:$0xff]  ;;  %v1332_v61 = vld [vmem:[#allocation7 + $0x60] sm:$0xff]  ;;  %v1334_v50 = vld [vmem:[#allocation7 + $0x70] sm:$0xff] }
 0x182   : > { %v1381_v39 = vmul.f32 %v1333_v12, %v2946_v45  ;;  %v1432_v12 = vld [vmem:[#allocation8 + $0x80] sm:$0xff] }
 0x183   : > { %1201 = vrot.lane.b32.xlu1 %v3122_v5, %s2643_s2  ;;  %1199 = vrot.lane.b32.xlu0 %v3118_v7, %s2643_s2 }
 0x184   : > { %1203 = vrot.lane.b32.xlu2 %v3140_v63, %s2643_s2 }
 0x185   : > { %v1172_v23 = vpop.permute.xlu1 %1171  ;;  %v1118_v8 = vpop.permute.xlu0 %1117 }
 0x186   : > { %v1230_v14 = vsel %vm1223_vm1, %v1172_v23, %v3062_v30  ;;  %v1231_v17 = vsel %vm1223_vm1, %v3062_v30, %v1118_v8  ;;  %v1307_v27 = vsel %vm1223_vm1, %v1118_v8, %v1172_v23  ;;  %v3155_v16 = vpop.permute.xlu2 %936  ;;  %v1574_v8 = vld [vmem:[#allocation10 + $0x70] sm:$0xff] }
 0x187   : > { %v1618_v26 = vmul.f32 %v1570_v25, %v1230_v14  ;;  %v1617_v29 = vmul.f32 %v1569_v53, %v1307_v27  ;;  %v1619_v35 = vmul.f32 %v1571_v20, %v1231_v17  ;;  %v3186_v25 = vpop.f32.mrf.mxu0  ;;  %v3188_v53 = vpop.f32.mrf.mxu1  ;;  %v1573_v20 = vld [vmem:[#allocation10 + $0x68] sm:$0xff]  ;;  %v1382_v14 = vmul.f32 %v1334_v50, %v2944_v44 }
 0x188   : > { %v3206_v44 = vpop.f32.mrf.mxu2 }
 0x189   : > { %v1666_v31 = vadd.f32 %v1618_v26, %v1522_v28  ;;  %v1665_v55 = vadd.f32 %v1617_v29, %v1521_v9  ;;  %v1667_v32 = vadd.f32 %v1619_v35, %v1523_v24  ;;  %v1380_v9 = vmul.f32 %v1332_v61, %v2942_v43  ;;  %v1577_v61 = vld [vmem:[#allocation10 + $0x88] sm:$0xff] }
 0x18b   : > { %v1707_v13 = vpack.c.bf16 %v1666_v31, %v1665_v55  ;;  %v1739_v36 = vpack.c.bf16 %v1667_v32, %v1667_v32  ;;  %1131 = vrot.lane.b32.xlu1 %v3120_v18, %s2643_s2  ;;  %968 = vrot.lane.b32.xlu0 %v3140_v63, %s2644_s3 }
 0x18c   : > { %972 = vrot.lane.b32.xlu2 %v3158_v34, %s2644_s3 }
 0x18d   : > { %1723 = vst [vmem:[%s3056_s29 + $0x18] sm:$0xff] %v1707_v13  ;;  %v929_v30 = vpop.permute.xlu1 %928  ;;  %v927_v37 = vpop.permute.xlu0 %926 }
 0x18e   : > { %1755 = vst [vmem:[%s3059_s7 + $0x18] sm:$0xf] %v1739_v36  ;;  %v3168_v21 = vpop.permute.xlu2 %1121  ;;  %v1008_v11 = vsel %vm998_vm0, %v929_v30, %v3111_v4  ;;  %v1007_v49 = vsel %vm998_vm0, %v927_v37, %v929_v30  ;;  %v1099_v51 = vsel %vm998_vm0, %v3111_v4, %v927_v37  ;;  %v1572_v4 = vld [vmem:[#allocation10 + $0x60] sm:$0xff]  ;;  %v1433_v36 = vld [vmem:[#allocation8 + $0x88] sm:$0xff] }
 0x18f   : > { %v1477_v52 = vmul.f32 %v1429_v42, %v1008_v11  ;;  %v1476_v28 = vmul.f32 %v1428_v47, %v1007_v49  ;;  %v1478_v23 = vmul.f32 %v1430_v48, %v1099_v51  ;;  %v1335_v11 = vld [vmem:[#allocation7 + $0x78] sm:$0xff]  ;;  %v1336_v47 = vld [vmem:[#allocation7 + $0x80] sm:$0xff] }
 0x190   : > { %v1431_v51 = vld [vmem:[#allocation8 + $0x78] sm:$0xff]  ;;  %v1383_v50 = vmul.f32 %v1335_v11, %v2954_v54  ;;  %v1576_v54 = vld [vmem:[#allocation10 + $0x80] sm:$0xff] }
 0x191   : > { %v1525_v26 = vadd.f32 %v1477_v52, %v1381_v39  ;;  %v1524_v45 = vadd.f32 %v1476_v28, %v1380_v9  ;;  %v1526_v55 = vadd.f32 %v1478_v23, %v1382_v14  ;;  %v1384_v52 = vmul.f32 %v1336_v47, %v2971_v57  ;;  %v1435_v47 = vld [vmem:[#allocation8 + $0x98] sm:$0xff] }
 0x192   : > { %v1309_v28 = vsel %vm1223_vm1, %v3168_v21, %v3133_v58 }
 0x193   : > { %970 = vrot.lane.b32.xlu1 %v3170_v38, %s2644_s3  ;;  %1205 = vrot.lane.b32.xlu0 %v3170_v38, %s2643_s2 }
 0x194   : > { %1133 = vrot.lane.b32.xlu2 %v3158_v34, %s2643_s2 }
 0x195   : > { %v1178_v3 = vpop.permute.xlu1 %1177  ;;  %v1176_v40 = vpop.permute.xlu0 %1175 }
 0x196   : > { %v3178_v41 = vpop.permute.xlu2 %1185  ;;  %v1232_v22 = vsel %vm1223_vm1, %v1176_v40, %v1178_v3 }
 0x197   : > { %v1621_v17 = vmul.f32 %v1573_v20, %v1232_v22  ;;  %v1575_v22 = vld [vmem:[#allocation10 + $0x78] sm:$0xff] }
 0x199   : > { %v1669_v30 = vadd.f32 %v1621_v17, %v1525_v26 }
 0x19b   : > { %976 = vrot.lane.b32.xlu1 %v3188_v53, %s2644_s3  ;;  %974 = vrot.lane.b32.xlu0 %v3186_v25, %s2644_s3 }
 0x19c   : > { %1209 = vrot.lane.b32.xlu2 %v3188_v53, %s2643_s2 }
 0x19d   : > { %v1120_v27 = vpop.permute.xlu1 %1119  ;;  %v933_v24 = vpop.permute.xlu0 %932 }
 0x19e   : > { %v1233_v29 = vsel %vm1223_vm1, %v1178_v3, %v1120_v27  ;;  %v1308_v35 = vsel %vm1223_vm1, %v1120_v27, %v1176_v40  ;;  %v3202_v31 = vpop.permute.xlu2 %942  ;;  %v1100_v43 = vsel %vm998_vm0, %v3155_v16, %v933_v24  ;;  %v1337_v3 = vld [vmem:[#allocation7 + $0x88] sm:$0xff] }
 0x19f   : > { %v1620_v32 = vmul.f32 %v1572_v4, %v1308_v35  ;;  %v1622_v13 = vmul.f32 %v1574_v8, %v1233_v29  ;;  %v1481_v49 = vmul.f32 %v1433_v36, %v1100_v43  ;;  %v1385_v20 = vmul.f32 %v1337_v3, %v2963_v56  ;;  %v3231_v35 = vpop.f32.mrf.mxu0  ;;  %v814_v43 = vpop.f32.mrf.mxu3 }
 0x1a0   : > { %v1623_v29 = vmul.f32 %v1575_v22, %v1309_v28 }
 0x1a1   : > { %v1668_v37 = vadd.f32 %v1620_v32, %v1524_v45  ;;  %v1670_v42 = vadd.f32 %v1622_v13, %v1526_v55  ;;  %v1529_v14 = vadd.f32 %v1481_v49, %v1385_v20  ;;  %v3233_v32 = vpop.f32.mrf.mxu1  ;;  %v3235_v13 = vpop.f32.mrf.mxu2 }
 0x1a3   : > { %v1708_v40 = vpack.c.bf16 %v1669_v30, %v1668_v37  ;;  %v1740_v48 = vpack.c.bf16 %v1670_v42, %v1670_v42  ;;  %1207 = vrot.lane.b32.xlu1 %v3186_v25, %s2643_s2  ;;  %1135 = vrot.lane.b32.xlu0 %v3206_v44, %s2643_s2  ;;  %v1768_v30 = vpack.c.bf16 %v814_v43, %v814_v43 }
 0x1a4   : > { %978 = vrot.lane.b32.xlu2 %v3206_v44, %s2644_s3 }
 0x1a5   : > { %1724 = vst [vmem:[%s3056_s29 + $0x20] sm:$0xff] %v1708_v40  ;;  %v935_v23 = vpop.permute.xlu1 %934  ;;  %v1182_v39 = vpop.permute.xlu0 %1181  ;;  %v1434_v40 = vld [vmem:[#allocation8 + $0x90] sm:$0xff] }
 0x1a6   : > { %1756 = vst [vmem:[%s3059_s7 + $0x20] sm:$0xf] %v1740_v48  ;;  %v1009_v4 = vsel %vm998_vm0, %v933_v24, %v935_v23  ;;  %v1010_v8 = vsel %vm998_vm0, %v935_v23, %v3155_v16  ;;  %v3225_v9 = vpop.permute.xlu2 %948  ;;  %v1234_v56 = vsel %vm1223_vm1, %v3133_v58, %v1182_v39  ;;  %v1235_v57 = vsel %vm1223_vm1, %v1182_v39, %v3168_v21 }
 0x1a7   : > { %v1479_v17 = vmul.f32 %v1431_v51, %v1009_v4  ;;  %v1480_v27 = vmul.f32 %v1432_v12, %v1010_v8  ;;  %v1625_v26 = vmul.f32 %v1577_v61, %v1235_v57  ;;  %v1624_v16 = vmul.f32 %v1576_v54, %v1234_v56  ;;  %1784 = vst [vmem:[%s3059_s7 + $0x4] sm:$0xf] %v1768_v30  ;;  %v1436_v51 = vld [vmem:[#allocation8 + $0xa0] sm:$0xff]  ;;  %v1338_v61 = vld [vmem:[#allocation7 + $0x90] sm:$0xff]  ;;  %v3253_v28 = vpop.f32.mrf.mxu0  ;;  %v1579_v8 = vld [vmem:[#allocation10 + $0x98] sm:$0xff] }
 0x1a8   : > { %v1386_v39 = vmul.f32 %v1338_v61, %v2980_v59  ;;  %v1578_v54 = vld [vmem:[#allocation10 + $0x90] sm:$0xff]  ;;  %v1580_v56 = vld [vmem:[#allocation10 + $0xa0] sm:$0xff] }
 0x1a9   : > { %v1527_v24 = vadd.f32 %v1479_v17, %v1383_v50  ;;  %v1528_v45 = vadd.f32 %v1480_v27, %v1384_v52  ;;  %v1673_v55 = vadd.f32 %v1625_v26, %v1529_v14  ;;  %v1339_v50 = vld [vmem:[#allocation7 + $0x98] sm:$0xff]  ;;  %v1340_v52 = vld [vmem:[#allocation7 + $0xa0] sm:$0xff]  ;;  %v3271_v30 = vpop.f32.mrf.mxu2 }
 0x1aa   : > { %v1387_v4 = vmul.f32 %v1339_v50, %v2982_v60 }
 0x1ab   : > { %v1671_v58 = vadd.f32 %v1623_v29, %v1527_v24  ;;  %v1672_v36 = vadd.f32 %v1624_v16, %v1528_v45  ;;  %v1741_v21 = vpack.c.bf16 %v1673_v55, %v1673_v55  ;;  %982 = vrot.lane.b32.xlu1 %v3233_v32, %s2644_s3  ;;  %980 = vrot.lane.b32.xlu0 %v3231_v35, %s2644_s3  ;;  %v816_v24 = vpop.f32.mrf.mxu3 }
 0x1ac   : > { %984 = vrot.lane.b32.xlu2 %v3235_v13, %s2644_s3 }
 0x1ad   : > { %v1709_v37 = vpack.c.bf16 %v1672_v36, %v1671_v58  ;;  %1757 = vst [vmem:[%s3059_s7 + $0x28] sm:$0xf] %v1741_v21  ;;  %v941_v42 = vpop.permute.xlu1 %940  ;;  %v939_v11 = vpop.permute.xlu0 %938  ;;  %v1769_v58 = vpack.c.bf16 %v816_v24, %v816_v24 }
 0x1ae   : > { %v1012_v3 = vsel %vm998_vm0, %v941_v42, %v3202_v31  ;;  %v1011_v48 = vsel %vm998_vm0, %v939_v11, %v941_v42  ;;  %v3247_v49 = vpop.permute.xlu2 %1191  ;;  %v1101_v12 = vsel %vm998_vm0, %v3202_v31, %v939_v11  ;;  %v1388_v31 = vmul.f32 %v1340_v52, %v2992_v62 }
 0x1af   : > { %1725 = vst [vmem:[%s3056_s29 + $0x28] sm:$0xff] %v1709_v37  ;;  %v1483_v20 = vmul.f32 %v1435_v47, %v1012_v3  ;;  %v1482_v22 = vmul.f32 %v1434_v40, %v1011_v48  ;;  %v1484_v23 = vmul.f32 %v1436_v51, %v1101_v12  ;;  %v3284_v40 = vpop.f32.mrf.mxu1  ;;  %v3286_v51 = vpop.f32.mrf.mxu0 }
 0x1b0   : > { %1785 = vst [vmem:[%s3059_s7 + $0xc] sm:$0xf] %v1769_v58 }
 0x1b1   : > { %v1531_v57 = vadd.f32 %v1483_v20, %v1387_v4  ;;  %v1530_v14 = vadd.f32 %v1482_v22, %v1386_v39  ;;  %v1532_v60 = vadd.f32 %v1484_v23, %v1388_v31  ;;  %v1438_v20 = vld [vmem:[#allocation8 + $0xb0] sm:$0xff]  ;;  %v1437_v23 = vld [vmem:[#allocation8 + $0xa8] sm:$0xff]  ;;  %v1439_v31 = vld [vmem:[#allocation8 + $0xb8] sm:$0xff] }
 0x1b3   : > { %1213 = vrot.lane.b32.xlu1 %v3233_v32, %s2643_s2  ;;  %1211 = vrot.lane.b32.xlu0 %v3231_v35, %s2643_s2  ;;  %v819_v3 = vpop.f32.mrf.mxu3 }
 0x1b4   : > { %1215 = vrot.lane.b32.xlu2 %v3253_v28, %s2643_s2  ;;  %v1770_v48 = vpack.c.bf16 %v819_v3, %v819_v3 }
 0x1b5   : > { %v1184_v17 = vpop.permute.xlu1 %1183  ;;  %v1124_v59 = vpop.permute.xlu0 %1123 }
 0x1b6   : > { %v1236_v27 = vsel %vm1223_vm1, %v1184_v17, %v3178_v41  ;;  %v1237_v26 = vsel %vm1223_vm1, %v3178_v41, %v1124_v59  ;;  %v1310_v62 = vsel %vm1223_vm1, %v1124_v59, %v1184_v17  ;;  %v3269_v29 = vpop.permute.xlu2 %954  ;;  %1786 = vst [vmem:[%s3059_s7 + $0x14] sm:$0xf] %v1770_v48 }
 0x1b7   : > { %v1627_v45 = vmul.f32 %v1579_v8, %v1236_v27  ;;  %v1626_v16 = vmul.f32 %v1578_v54, %v1310_v62  ;;  %v1628_v55 = vmul.f32 %v1580_v56, %v1237_v26  ;;  %v1341_v54 = vld [vmem:[#allocation7 + $0xa8] sm:$0xff]  ;;  %v1342_v56 = vld [vmem:[#allocation7 + $0xb0] sm:$0xff]  ;;  %v3303_v59 = vpop.f32.mrf.mxu1 }
 0x1b8   : > { %v1582_v27 = vld [vmem:[#allocation10 + $0xb0] sm:$0xff]  ;;  %v1390_v24 = vmul.f32 %v1342_v56, %v3005_v1  ;;  %v1440_v56 = vld [vmem:[#allocation8 + $0xc0] sm:$0xff] }
 0x1b9   : > { %v1675_v36 = vadd.f32 %v1627_v45, %v1531_v57  ;;  %v1674_v21 = vadd.f32 %v1626_v16, %v1530_v14  ;;  %v1676_v43 = vadd.f32 %v1628_v55, %v1532_v60  ;;  %v1343_v57 = vld [vmem:[#allocation7 + $0xb8] sm:$0xff]  ;;  %v3305_v60 = vpop.f32.mrf.mxu2  ;;  %v1581_v45 = vld [vmem:[#allocation10 + $0xa8] sm:$0xff] }
 0x1ba   : > { %v1583_v16 = vld [vmem:[#allocation10 + $0xb8] sm:$0xff]  ;;  %v1391_v55 = vmul.f32 %v1343_v57, %v3007_v2  ;;  %v1441_v57 = vld [vmem:[#allocation8 + $0xc8] sm:$0xff] }
 0x1bb   : > { %v1710_v37 = vpack.c.bf16 %v1675_v36, %v1674_v21  ;;  %v1742_v41 = vpack.c.bf16 %v1676_v43, %v1676_v43  ;;  %1137 = vrot.lane.b32.xlu1 %v3235_v13, %s2643_s2  ;;  %986 = vrot.lane.b32.xlu0 %v3253_v28, %s2644_s3  ;;  %v821_v52 = vpop.f32.mrf.mxu3 }
 0x1bc   : > { %990 = vrot.lane.b32.xlu2 %v3271_v30, %s2644_s3  ;;  %v1771_v4 = vpack.c.bf16 %v821_v52, %v821_v52 }
 0x1bd   : > { %1726 = vst [vmem:[%s3056_s29 + $0x30] sm:$0xff] %v1710_v37  ;;  %v947_v42 = vpop.permute.xlu1 %946  ;;  %v945_v11 = vpop.permute.xlu0 %944 }
 0x1be   : > { %1758 = vst [vmem:[%s3059_s7 + $0x30] sm:$0xf] %v1742_v41  ;;  %v3282_v47 = vpop.permute.xlu2 %1127  ;;  %v1014_v22 = vsel %vm998_vm0, %v947_v42, %v3225_v9  ;;  %v1013_v39 = vsel %vm998_vm0, %v945_v11, %v947_v42  ;;  %v1102_v8 = vsel %vm998_vm0, %v3225_v9, %v945_v11  ;;  %v1389_v9 = vmul.f32 %v1341_v54, %v3003_v0 }
 0x1bf   : > { %1787 = vst [vmem:[%s3059_s7 + $0x1c] sm:$0xf] %v1771_v4  ;;  %v1486_v14 = vmul.f32 %v1438_v20, %v1014_v22  ;;  %v1485_v17 = vmul.f32 %v1437_v23, %v1013_v39  ;;  %v1487_v62 = vmul.f32 %v1439_v31, %v1102_v8  ;;  %v1442_v20 = vld [vmem:[#allocation8 + $0xd0] sm:$0xff]  ;;  %v1344_v4 = vld [vmem:[#allocation7 + $0xc0] sm:$0xff]  ;;  %v1345_v31 = vld [vmem:[#allocation7 + $0xc8] sm:$0xff] }
 0x1c1   : > { %v1534_v43 = vadd.f32 %v1486_v14, %v1390_v24  ;;  %v1533_v37 = vadd.f32 %v1485_v17, %v1389_v9  ;;  %v1535_v11 = vadd.f32 %v1487_v62, %v1391_v55  ;;  %v1586_v14 = vld [vmem:[#allocation10 + $0xd0] sm:$0xff]  ;;  %v1392_v17 = vmul.f32 %v1344_v4, %v3017_v6  ;;  %v1584_v62 = vld [vmem:[#allocation10 + $0xc0] sm:$0xff]  ;;  %v1443_v4 = vld [vmem:[#allocation8 + $0xd8] sm:$0xff] }
 0x1c2   : > { %v1312_v9 = vsel %vm1223_vm1, %v3282_v47, %v3247_v49 }
 0x1c3   : > { %988 = vrot.lane.b32.xlu1 %v3284_v40, %s2644_s3  ;;  %992 = vrot.lane.b32.xlu0 %v3286_v51, %s2644_s3  ;;  %v824_v1 = vpop.f32.mrf.mxu3 }
 0x1c4   : > { %1139 = vrot.lane.b32.xlu2 %v3271_v30, %s2643_s2  ;;  %v1772_v52 = vpack.c.bf16 %v824_v1, %v824_v1 }
 0x1c5   : > { %v1190_v12 = vpop.permute.xlu1 %1189  ;;  %v1188_v61 = vpop.permute.xlu0 %1187 }
 0x1c6   : > { %v3295_v50 = vpop.permute.xlu2 %1197  ;;  %v1238_v26 = vsel %vm1223_vm1, %v1188_v61, %v1190_v12  ;;  %1788 = vst [vmem:[%s3059_s7 + $0x24] sm:$0xf] %v1772_v52 }
 0x1c7   : > { %v1630_v58 = vmul.f32 %v1582_v27, %v1238_v26  ;;  %v1393_v27 = vmul.f32 %v1345_v31, %v3048_v10  ;;  %v1585_v10 = vld [vmem:[#allocation10 + $0xc8] sm:$0xff] }
 0x1c9   : > { %v1678_v22 = vadd.f32 %v1630_v58, %v1534_v43 }
 0x1cb   : > { %994 = vrot.lane.b32.xlu1 %v3303_v59, %s2644_s3  ;;  %1141 = vrot.lane.b32.xlu0 %v3305_v60, %s2643_s2 }
 0x1cc   : > { %996 = vrot.lane.b32.xlu2 %v3305_v60, %s2644_s3 }
 0x1cd   : > { %v1126_v36 = vpop.permute.xlu1 %1125  ;;  %v951_v21 = vpop.permute.xlu0 %950 }
 0x1ce   : > { %v1239_v41 = vsel %vm1223_vm1, %v1190_v12, %v1126_v36  ;;  %v1311_v42 = vsel %vm1223_vm1, %v1126_v36, %v1188_v61  ;;  %v3319_v0 = vpop.permute.xlu2 %960  ;;  %v1103_v2 = vsel %vm998_vm0, %v3269_v29, %v951_v21  ;;  %v1346_v12 = vld [vmem:[#allocation7 + $0xd0] sm:$0xff]  ;;  %v826_v36 = vpop.f32.mrf.mxu3 }
 0x1cf   : > { %v1629_v3 = vmul.f32 %v1581_v45, %v1311_v42  ;;  %v1631_v48 = vmul.f32 %v1583_v16, %v1239_v41  ;;  %v1490_v54 = vmul.f32 %v1442_v20, %v1103_v2  ;;  %v1394_v26 = vmul.f32 %v1346_v12, %v3031_v33 }
 0x1d0   : > { %v1773_v1 = vpack.c.bf16 %v826_v36, %v826_v36 }
 0x1d1   : > { %v1677_v23 = vadd.f32 %v1629_v3, %v1533_v37  ;;  %v1679_v39 = vadd.f32 %v1631_v48, %v1535_v11  ;;  %v1538_v43 = vadd.f32 %v1490_v54, %v1394_v26 }
 0x1d2   : > { %1789 = vst [vmem:[%s3059_s7 + $0x2c] sm:$0xf] %v1773_v1 }
 0x1d3   : > { %v1711_v61 = vpack.c.bf16 %v1678_v22, %v1677_v23  ;;  %v1743_v8 = vpack.c.bf16 %v1679_v39, %v1679_v39  ;;  %1219 = vrot.lane.b32.xlu1 %v3286_v51, %s2643_s2  ;;  %1217 = vrot.lane.b32.xlu0 %v3284_v40, %s2643_s2  ;;  %v1444_v23 = vld [vmem:[#allocation8 + $0xe0] sm:$0xff] }
 0x1d4   : > { %1221 = vrot.lane.b32.xlu2 %v3303_v59, %s2643_s2  ;;  %s2525_s2 = scalar_lea.hbm %s2524_s11, 128 }
 0x1d5   : > { %1727 = vst [vmem:[%s3056_s29 + $0x38] sm:$0xff] %v1711_v61  ;;  %v953_v24 = vpop.permute.xlu1 %952  ;;  %v1194_v45 = vpop.permute.xlu0 %1193  ;;  %p2526_p1 = scmp.ne.s32.totalorder %s2524_s11, %s2525_s2  ;;  %p2531_p12 = scmp.lt.s32.totalorder %s2529_s12, %s2525_s2 }
 0x1d6   : > { %1759 = vst [vmem:[%s3059_s7 + $0x38] sm:$0xf] %v1743_v8  ;;  %v1015_v16 = vsel %vm998_vm0, %v951_v21, %v953_v24  ;;  %v1016_v55 = vsel %vm998_vm0, %v953_v24, %v3269_v29  ;;  %v3341_v6 = vpop.permute.xlu2 %966  ;;  %v1240_v33 = vsel %vm1223_vm1, %v3247_v49, %v1194_v45  ;;  %v1241_v58 = vsel %vm1223_vm1, %v1194_v45, %v3282_v47  ;;  %v829_v61 = vpop.f32.mrf.mxu3  ;;  %v1445_v8 = vld [vmem:[#allocation8 + $0xe8] sm:$0xff] }
 0x1d7   : > { %v1488_v37 = vmul.f32 %v1440_v56, %v1015_v16  ;;  %v1489_v41 = vmul.f32 %v1441_v57, %v1016_v55  ;;  %v1634_v42 = vmul.f32 %v1586_v14, %v1241_v58  ;;  %v1632_v21 = vmul.f32 %v1584_v62, %v1312_v9  ;;  %v1347_v57 = vld [vmem:[#allocation7 + $0xd8] sm:$0xff]  ;;  %v1348_v14 = vld [vmem:[#allocation7 + $0xe0] sm:$0xff]  ;;  %p2527_p4 = pnand %p2526_p1, %p2783_p7  ;;  %p2532_p13 = por %p2531_p12, %p2530_p10 }
 0x1d8   : > { %v1633_v3 = vmul.f32 %v1585_v10, %v1240_v33  ;;  %v1774_v56 = vpack.c.bf16 %v829_v61, %v829_v61  ;;  %v1395_v9 = vmul.f32 %v1347_v57, %v3072_v46  ;;  %v1396_v24 = vmul.f32 %v1348_v14, %v3074_v15  ;;  %v1588_v16 = vld [vmem:[#allocation10 + $0xe0] sm:$0xff]  ;;  %v1587_v55 = vld [vmem:[#allocation10 + $0xd8] sm:$0xff]  ;;  %v1589_v10 = vld [vmem:[#allocation10 + $0xe8] sm:$0xff] }
 0x1d9   : > { %v1536_v11 = vadd.f32 %v1488_v37, %v1392_v17  ;;  %v1537_v29 = vadd.f32 %v1489_v41, %v1393_v27  ;;  %v1682_v48 = vadd.f32 %v1634_v42, %v1538_v43  ;;  %v1349_v17 = vld [vmem:[#allocation7 + $0xe8] sm:$0xff]  ;;  %v1447_v61 = vld [vmem:[#allocation8 + $0xf8] sm:$0xff]  ;;  %v1448_v14 = vld [vmem:[#allocation8 + $0x100] sm:$0xff]  ;;  %p2528_p8 = pneg %p2527_p4 }
 0x1da   : > { %1790 = vst [vmem:[%s3059_s7 + $0x34] sm:$0xf] %v1774_v56  ;;  %v1397_v45 = vmul.f32 %v1349_v17, %v3092_v19 }
 0x1db   : > { %v1680_v52 = vadd.f32 %v1632_v21, %v1536_v11  ;;  %v1681_v20 = vadd.f32 %v1633_v3, %v1537_v29  ;;  %v1744_v49 = vpack.c.bf16 %v1682_v48, %v1682_v48  ;;  %p2533_p0 = pnand %p2532_p13, %p2528_p8 }
 0x1dd   : > { %v1712_v2 = vpack.c.bf16 %v1681_v20, %v1680_v52  ;;  %1760 = vst [vmem:[%s3059_s7 + $0x40] sm:$0xf] %v1744_v49  ;;  %v959_v47 = vpop.permute.xlu1 %958  ;;  %v957_v22 = vpop.permute.xlu0 %956 }
 0x1de   : > { %v1018_v39 = vsel %vm998_vm0, %v959_v47, %v3319_v0  ;;  %v1017_v31 = vsel %vm998_vm0, %v957_v22, %v959_v47  ;;  %v3352_v12 = vpop.permute.xlu2 %1203  ;;  %v1104_v54 = vsel %vm998_vm0, %v3319_v0, %v957_v22  ;;  %v831_v41 = vpop.f32.mrf.mxu3 }
 0x1df   : > { %1728 = vst [vmem:[%s3056_s29 + $0x40] sm:$0xff] %v1712_v2  ;;  %v1492_v27 = vmul.f32 %v1444_v23, %v1018_v39  ;;  %v1491_v26 = vmul.f32 %v1443_v4, %v1017_v31  ;;  %v1493_v62 = vmul.f32 %v1445_v8, %v1104_v54  ;;  %v1775_v11 = vpack.c.bf16 %v831_v41, %v831_v41  ;;  %v1446_v54 = vld [vmem:[#allocation8 + $0xf0] sm:$0xff] }
 0x1e1   : > { %v1540_v33 = vadd.f32 %v1492_v27, %v1396_v24  ;;  %v1539_v58 = vadd.f32 %v1491_v26, %v1395_v9  ;;  %v1541_v43 = vadd.f32 %v1493_v62, %v1397_v45  ;;  %1791 = vst [vmem:[%s3059_s7 + $0x3c] sm:$0xf] %v1775_v11  ;;  %v1350_v27 = vld [vmem:[#allocation7 + $0xf0] sm:$0xff]  ;;  %v1351_v26 = vld [vmem:[#allocation7 + $0xf8] sm:$0xff]  ;;  %v1352_v62 = vld [vmem:[#allocation7 + $0x100] sm:$0xff] }
 0x1e2   : > { %v1591_v45 = vld [vmem:[#allocation10 + $0xf8] sm:$0xff] }
 0x1e5   : > { %v1196_v0 = vpop.permute.xlu1 %1195  ;;  %v1130_v36 = vpop.permute.xlu0 %1129 }
 0x1e6   : > { %v1242_v37 = vsel %vm1223_vm1, %v1196_v0, %v3295_v50  ;;  %v1243_v46 = vsel %vm1223_vm1, %v3295_v50, %v1130_v36  ;;  %v1313_v15 = vsel %vm1223_vm1, %v1130_v36, %v1196_v0  ;;  %v3366_v19 = vpop.permute.xlu2 %972  ;;  %v834_v47 = vpop.f32.mrf.mxu3  ;;  %v1592_v0 = vld [vmem:[#allocation10 + $0x100] sm:$0xff]  ;;  %v1400_v36 = vmul.f32 %v1352_v62, %v3120_v18 }
 0x1e7   : > { %v1636_v42 = vmul.f32 %v1588_v16, %v1242_v37  ;;  %v1635_v21 = vmul.f32 %v1587_v55, %v1313_v15  ;;  %v1637_v1 = vmul.f32 %v1589_v10, %v1243_v46  ;;  %v1776_v22 = vpack.c.bf16 %v834_v47, %v834_v47  ;;  %v1355_v47 = vld [vmem:[#allocation7 + $0x118] sm:$0xff] }
 0x1e8   : > { %v1398_v10 = vmul.f32 %v1350_v27, %v3118_v7 }
 0x1e9   : > { %v1684_v29 = vadd.f32 %v1636_v42, %v1540_v33  ;;  %v1683_v3 = vadd.f32 %v1635_v21, %v1539_v58  ;;  %v1685_v48 = vadd.f32 %v1637_v1, %v1541_v43  ;;  %1792 = vst [vmem:[%s3059_s7 + $0x44] sm:$0xf] %v1776_v22  ;;  %v1399_v33 = vmul.f32 %v1351_v26, %v3122_v5  ;;  %v1590_v58 = vld [vmem:[#allocation10 + $0xf0] sm:$0xff] }
 0x1eb   : > { %v1713_v52 = vpack.c.bf16 %v1684_v29, %v1683_v3  ;;  %v1745_v20 = vpack.c.bf16 %v1685_v48, %v1685_v48  ;;  %v1451_v3 = vld [vmem:[#allocation8 + $0x118] sm:$0xff] }
 0x1ed   : > { %1729 = vst [vmem:[%s3056_s29 + $0x48] sm:$0xff] %v1713_v52  ;;  %v965_v49 = vpop.permute.xlu1 %964  ;;  %v963_v50 = vpop.permute.xlu0 %962 }
 0x1ee   : > { %1761 = vst [vmem:[%s3059_s7 + $0x48] sm:$0xf] %v1745_v20  ;;  %v3371_v2 = vpop.permute.xlu2 %1133  ;;  %v836_v31 = vpop.f32.mrf.mxu3  ;;  %v1020_v8 = vsel %vm998_vm0, %v965_v49, %v3341_v6  ;;  %v1019_v56 = vsel %vm998_vm0, %v963_v50, %v965_v49  ;;  %v1105_v17 = vsel %vm998_vm0, %v3341_v6, %v963_v50  ;;  %v1353_v49 = vld [vmem:[#allocation7 + $0x108] sm:$0xff]  ;;  %v1354_v50 = vld [vmem:[#allocation7 + $0x110] sm:$0xff] }
 0x1ef   : > { %v1777_v57 = vpack.c.bf16 %v836_v31, %v836_v31  ;;  %v1495_v9 = vmul.f32 %v1447_v61, %v1020_v8  ;;  %v1494_v24 = vmul.f32 %v1446_v54, %v1019_v56  ;;  %v1496_v55 = vmul.f32 %v1448_v14, %v1105_v17  ;;  %v1449_v31 = vld [vmem:[#allocation8 + $0x108] sm:$0xff]  ;;  %v1450_v61 = vld [vmem:[#allocation8 + $0x110] sm:$0xff]  ;;  %v1595_v8 = vld [vmem:[#allocation10 + $0x118] sm:$0xff] }
 0x1f0   : > { %v1401_v54 = vmul.f32 %v1353_v49, %v3140_v63  ;;  %v1402_v56 = vmul.f32 %v1354_v50, %v3170_v38  ;;  %v1593_v14 = vld [vmem:[#allocation10 + $0x108] sm:$0xff]  ;;  %v1315_v17 = vsel %vm1223_vm1, %v3371_v2, %v3352_v12  ;;  %v1594_v63 = vld [vmem:[#allocation10 + $0x110] sm:$0xff] }
 0x1f1   : > { %1793 = vst [vmem:[%s3059_s7 + $0x4c] sm:$0xf] %v1777_v57  ;;  %v1543_v46 = vadd.f32 %v1495_v9, %v1399_v33  ;;  %v1542_v15 = vadd.f32 %v1494_v24, %v1398_v10  ;;  %v1544_v1 = vadd.f32 %v1496_v55, %v1400_v36  ;;  %v1403_v57 = vmul.f32 %v1355_v47, %v3158_v34 }
 0x1f2   : > { %v1641_v33 = vmul.f32 %v1593_v14, %v1315_v17 }
 0x1f5   : > { %v1202_v23 = vpop.permute.xlu1 %1201  ;;  %v1200_v39 = vpop.permute.xlu0 %1199 }
 0x1f6   : > { %v3374_v4 = vpop.permute.xlu2 %1209  ;;  %v1244_v16 = vsel %vm1223_vm1, %v1200_v39, %v1202_v23  ;;  %v839_v21 = vpop.f32.mrf.mxu3 }
 0x1f7   : > { %v1639_v43 = vmul.f32 %v1591_v45, %v1244_v16  ;;  %v1778_v29 = vpack.c.bf16 %v839_v21, %v839_v21 }
 0x1f9   : > { %v1687_v48 = vadd.f32 %v1639_v43, %v1543_v46  ;;  %1794 = vst [vmem:[%s3059_s7 + $0x54] sm:$0xf] %v1778_v29  ;;  %v1454_v29 = vld [vmem:[#allocation8 + $0x130] sm:$0xff] }
 0x1fd   : > { %v1132_v6 = vpop.permute.xlu1 %1131  ;;  %v969_v37 = vpop.permute.xlu0 %968 }
 0x1fe   : > { %v1245_v41 = vsel %vm1223_vm1, %v1202_v23, %v1132_v6  ;;  %v1314_v42 = vsel %vm1223_vm1, %v1132_v6, %v1200_v39  ;;  %v979_v5 = vpop.permute.xlu2 %978  ;;  %v1106_v18 = vsel %vm998_vm0, %v3366_v19, %v969_v37  ;;  %v841_v24 = vpop.f32.mrf.mxu3 }
 0x1ff   : > { %v1638_v11 = vmul.f32 %v1590_v58, %v1314_v42  ;;  %v1640_v7 = vmul.f32 %v1592_v0, %v1245_v41  ;;  %v1499_v39 = vmul.f32 %v1451_v3, %v1106_v18  ;;  %v1779_v58 = vpack.c.bf16 %v841_v24, %v841_v24  ;;  %v1453_v42 = vld [vmem:[#allocation8 + $0x128] sm:$0xff] }
 0x201   : > { %v1686_v52 = vadd.f32 %v1638_v11, %v1542_v15  ;;  %v1688_v20 = vadd.f32 %v1640_v7, %v1544_v1  ;;  %v1547_v45 = vadd.f32 %v1499_v39, %v1403_v57  ;;  %1795 = vst [vmem:[%s3059_s7 + $0x5c] sm:$0xf] %v1779_v58  ;;  %v1452_v1 = vld [vmem:[#allocation8 + $0x120] sm:$0xff] }
 0x203   : > { %v1714_v22 = vpack.c.bf16 %v1687_v48, %v1686_v52  ;;  %v1746_v23 = vpack.c.bf16 %v1688_v20, %v1688_v20  ;;  %v1356_v48 = vld [vmem:[#allocation7 + $0x120] sm:$0xff]  ;;  %v1357_v52 = vld [vmem:[#allocation7 + $0x128] sm:$0xff]  ;;  %v1358_v20 = vld [vmem:[#allocation7 + $0x130] sm:$0xff] }
 0x204   : > { %v1406_v39 = vmul.f32 %v1358_v20, %v3206_v44  ;;  %v1599_v20 = vld [vmem:[#allocation10 + $0x138] sm:$0xff] }
 0x205   : > { %1730 = vst [vmem:[%s3056_s29 + $0x50] sm:$0xff] %v1714_v22  ;;  %v971_v27 = vpop.permute.xlu1 %970  ;;  %v1206_v26 = vpop.permute.xlu0 %1205  ;;  %v1404_v22 = vmul.f32 %v1356_v48, %v3186_v25 }
 0x206   : > { %1762 = vst [vmem:[%s3059_s7 + $0x50] sm:$0xf] %v1746_v23  ;;  %v1021_v62 = vsel %vm998_vm0, %v969_v37, %v971_v27  ;;  %v1022_v9 = vsel %vm998_vm0, %v971_v27, %v3366_v19  ;;  %v1246_v38 = vsel %vm1223_vm1, %v3352_v12, %v1206_v26  ;;  %v1247_v34 = vsel %vm1223_vm1, %v1206_v26, %v3371_v2  ;;  %v3406_v6 = vpop.permute.xlu2 %984  ;;  %v844_v7 = vpop.f32.mrf.mxu3 }
 0x207   : > { %v1497_v16 = vmul.f32 %v1449_v31, %v1021_v62  ;;  %v1498_v55 = vmul.f32 %v1450_v61, %v1022_v9  ;;  %v1643_v10 = vmul.f32 %v1595_v8, %v1247_v34  ;;  %v1642_v43 = vmul.f32 %v1594_v63, %v1246_v38  ;;  %v1597_v61 = vld [vmem:[#allocation10 + $0x128] sm:$0xff]  ;;  %v1596_v8 = vld [vmem:[#allocation10 + $0x120] sm:$0xff] }
 0x208   : > { %v1780_v18 = vpack.c.bf16 %v844_v7, %v844_v7  ;;  %v1405_v23 = vmul.f32 %v1357_v52, %v3188_v53 }
 0x209   : > { %v1545_v0 = vadd.f32 %v1497_v16, %v1401_v54  ;;  %v1546_v36 = vadd.f32 %v1498_v55, %v1402_v56  ;;  %v1691_v19 = vadd.f32 %v1643_v10, %v1547_v45  ;;  %v1598_v54 = vld [vmem:[#allocation10 + $0x130] sm:$0xff] }
 0x20a   : > { %1796 = vst [vmem:[%s3059_s7 + $0x64] sm:$0xf] %v1780_v18 }
 0x20b   : > { %v1689_v12 = vadd.f32 %v1641_v33, %v1545_v0  ;;  %v1690_v37 = vadd.f32 %v1642_v43, %v1546_v36  ;;  %v1747_v46 = vpack.c.bf16 %v1691_v19, %v1691_v19  ;;  %v1456_v19 = vld [vmem:[#allocation8 + $0x140] sm:$0xff] }
 0x20d   : > { %v1715_v2 = vpack.c.bf16 %v1690_v37, %v1689_v12  ;;  %1763 = vst [vmem:[%s3059_s7 + $0x58] sm:$0xf] %v1747_v46  ;;  %v977_v15 = vpop.permute.xlu1 %976  ;;  %v975_v41 = vpop.permute.xlu0 %974  ;;  %v1455_v46 = vld [vmem:[#allocation8 + $0x138] sm:$0xff] }
 0x20e   : > { %v1024_v21 = vsel %vm998_vm0, %v977_v15, %v979_v5  ;;  %v1023_v11 = vsel %vm998_vm0, %v975_v41, %v977_v15  ;;  %v1107_v3 = vsel %vm998_vm0, %v979_v5, %v975_v41  ;;  %v3418_v31 = vpop.permute.xlu2 %1215  ;;  %v846_v44 = vpop.f32.mrf.mxu3 }
 0x20f   : > { %1731 = vst [vmem:[%s3056_s29 + $0x58] sm:$0xff] %v1715_v2  ;;  %v1501_v49 = vmul.f32 %v1453_v42, %v1024_v21  ;;  %v1500_v50 = vmul.f32 %v1452_v1, %v1023_v11  ;;  %v1502_v47 = vmul.f32 %v1454_v29, %v1107_v3  ;;  %v1781_v63 = vpack.c.bf16 %v846_v44, %v846_v44  ;;  %v1457_v2 = vld [vmem:[#allocation8 + $0x148] sm:$0xff]  ;;  %v1360_v21 = vld [vmem:[#allocation7 + $0x140] sm:$0xff]  ;;  %v1359_v1 = vld [vmem:[#allocation7 + $0x138] sm:$0xff] }
 0x210   : > { %v1361_v11 = vld [vmem:[#allocation7 + $0x148] sm:$0xff]  ;;  %v1600_v29 = vld [vmem:[#allocation10 + $0x140] sm:$0xff]  ;;  %v1408_v52 = vmul.f32 %v1360_v21, %v3233_v32  ;;  %v1463_v44 = vld [vmem:[#allocation8 + $0x178] sm:$0xff] }
 0x211   : > { %v1549_v5 = vadd.f32 %v1501_v49, %v1405_v23  ;;  %v1548_v56 = vadd.f32 %v1500_v50, %v1404_v22  ;;  %v1550_v17 = vadd.f32 %v1502_v47, %v1406_v39  ;;  %1797 = vst [vmem:[%s3059_s7 + $0x6c] sm:$0xf] %v1781_v63  ;;  %v1601_v49 = vld [vmem:[#allocation10 + $0x148] sm:$0xff]  ;;  %v1407_v50 = vmul.f32 %v1359_v1, %v3231_v35  ;;  %v1364_v21 = vld [vmem:[#allocation7 + $0x160] sm:$0xff]  ;;  %v1366_v1 = vld [vmem:[#allocation7 + $0x170] sm:$0xff] }
 0x215   : > { %v1208_v57 = vpop.permute.xlu1 %1207  ;;  %v1136_v14 = vpop.permute.xlu0 %1135 }
 0x216   : > { %v1248_v27 = vsel %vm1223_vm1, %v1208_v57, %v3374_v4  ;;  %v1249_v25 = vsel %vm1223_vm1, %v3374_v4, %v1136_v14  ;;  %v1316_v53 = vsel %vm1223_vm1, %v1136_v14, %v1208_v57  ;;  %v3428_v4 = vpop.permute.xlu2 %990  ;;  %v849_v33 = vpop.f32.mrf.mxu3 }
 0x217   : > { %v1645_v26 = vmul.f32 %v1597_v61, %v1248_v27  ;;  %v1644_v62 = vmul.f32 %v1596_v8, %v1316_v53  ;;  %v1646_v9 = vmul.f32 %v1598_v54, %v1249_v25  ;;  %v1782_v58 = vpack.c.bf16 %v849_v33, %v849_v33 }
 0x219   : > { %v1693_v38 = vadd.f32 %v1645_v26, %v1549_v5  ;;  %v1692_v34 = vadd.f32 %v1644_v62, %v1548_v56  ;;  %v1694_v24 = vadd.f32 %v1646_v9, %v1550_v17  ;;  %1798 = vst [vmem:[%s3059_s7 + $0x74] sm:$0xf] %v1782_v58  ;;  %v1367_v62 = vld [vmem:[#allocation7 + $0x178] sm:$0xff] }
 0x21a   : > { %v1459_v58 = vld [vmem:[#allocation8 + $0x158] sm:$0xff] }
 0x21b   : > { %v1716_v45 = vpack.c.bf16 %v1693_v38, %v1692_v34  ;;  %v1748_v16 = vpack.c.bf16 %v1694_v24, %v1694_v24  ;;  %v1607_v38 = vld [vmem:[#allocation10 + $0x178] sm:$0xff]  ;;  %v1415_v34 = vmul.f32 %v1367_v62, %v3305_v60  ;;  %v1460_v24 = vld [vmem:[#allocation8 + $0x160] sm:$0xff] }
 0x21d   : > { %1732 = vst [vmem:[%s3056_s29 + $0x60] sm:$0xff] %v1716_v45  ;;  %v983_v55 = vpop.permute.xlu1 %982  ;;  %v981_v10 = vpop.permute.xlu0 %980 }
 0x21e   : > { %1764 = vst [vmem:[%s3059_s7 + $0x60] sm:$0xf] %v1748_v16  ;;  %v851_v43 = vpop.f32.mrf.mxu3  ;;  %v1026_v12 = vsel %vm998_vm0, %v983_v55, %v3406_v6  ;;  %v1025_v15 = vsel %vm998_vm0, %v981_v10, %v983_v55  ;;  %v1108_v41 = vsel %vm998_vm0, %v3406_v6, %v981_v10  ;;  %v3436_v42 = vpop.permute.xlu2 %1139  ;;  %v1409_v6 = vmul.f32 %v1361_v11, %v3235_v13  ;;  %v1458_v16 = vld [vmem:[#allocation8 + $0x150] sm:$0xff] }
 0x21f   : > { %v1783_v37 = vpack.c.bf16 %v851_v43, %v851_v43  ;;  %v1504_v7 = vmul.f32 %v1456_v19, %v1026_v12  ;;  %v1503_v18 = vmul.f32 %v1455_v46, %v1025_v15  ;;  %v1505_v48 = vmul.f32 %v1457_v2, %v1108_v41  ;;  %v1462_v43 = vld [vmem:[#allocation8 + $0x170] sm:$0xff]  ;;  %v1365_v46 = vld [vmem:[#allocation7 + $0x168] sm:$0xff]  ;;  %v1363_v41 = vld [vmem:[#allocation7 + $0x158] sm:$0xff] }
 0x221   : > { %1799 = vst [vmem:[%s3059_s7 + $0x7c] sm:$0xf] %v1783_v37  ;;  %v1552_v39 = vadd.f32 %v1504_v7, %v1408_v52  ;;  %v1551_v54 = vadd.f32 %v1503_v18, %v1407_v50  ;;  %v1553_v5 = vadd.f32 %v1505_v48, %v1409_v6  ;;  %v1362_v37 = vld [vmem:[#allocation7 + $0x150] sm:$0xff]  ;;  %v1411_v50 = vmul.f32 %v1363_v41, %v3284_v40 }
 0x222   : > { %v1412_v6 = vmul.f32 %v1364_v21, %v3271_v30 }
 0x225   : > { %v1214_v0 = vpop.permute.xlu1 %1213  ;;  %v1212_v36 = vpop.permute.xlu0 %1211 }
 0x226   : > { %v1250_v3 = vsel %vm1223_vm1, %v1212_v36, %v1214_v0  ;;  %v997_v35 = vpop.permute.xlu2 %996 }
 0x227   : > { %v1648_v47 = vmul.f32 %v1600_v29, %v1250_v3  ;;  %v1602_v29 = vld [vmem:[#allocation10 + $0x150] sm:$0xff] }
 0x229   : > { %v1696_v57 = vadd.f32 %v1648_v47, %v1552_v39  ;;  %v1414_v47 = vmul.f32 %v1366_v1, %v3303_v59 }
 0x22d   : > { %v1138_v22 = vpop.permute.xlu1 %1137  ;;  %v987_v23 = vpop.permute.xlu0 %986 }
 0x22e   : > { %v1251_v61 = vsel %vm1223_vm1, %v1214_v0, %v1138_v22  ;;  %v1317_v8 = vsel %vm1223_vm1, %v1138_v22, %v1212_v36  ;;  %v1222_v63 = vpop.permute.xlu2 %1221  ;;  %v1109_v45 = vsel %vm998_vm0, %v3428_v4, %v987_v23  ;;  %v1461_v36 = vld [vmem:[#allocation8 + $0x168] sm:$0xff] }
 0x22f   : > { %v1647_v56 = vmul.f32 %v1599_v20, %v1317_v8  ;;  %v1649_v32 = vmul.f32 %v1601_v49, %v1251_v61  ;;  %v1508_v11 = vmul.f32 %v1460_v24, %v1109_v45  ;;  %v1410_v20 = vmul.f32 %v1362_v37, %v3253_v28  ;;  %v1606_v8 = vld [vmem:[#allocation10 + $0x170] sm:$0xff] }
 0x230   : > { %v1413_v49 = vmul.f32 %v1365_v46, %v3286_v51 }
 0x231   : > { %v1695_v14 = vadd.f32 %v1647_v56, %v1551_v54  ;;  %v1697_v17 = vadd.f32 %v1649_v32, %v1553_v5  ;;  %v1603_v54 = vld [vmem:[#allocation10 + $0x158] sm:$0xff]  ;;  %v1604_v5 = vld [vmem:[#allocation10 + $0x160] sm:$0xff]  ;;  %v1556_v56 = vadd.f32 %v1508_v11, %v1412_v6 }
 0x233   : > { %v1717_v27 = vpack.c.bf16 %v1696_v57, %v1695_v14  ;;  %v1749_v13 = vpack.c.bf16 %v1697_v17, %v1697_v17 }
 0x235   : > { %1733 = vst [vmem:[%s3056_s29 + $0x68] sm:$0xff] %v1717_v27  ;;  %v989_v25 = vpop.permute.xlu1 %988  ;;  %v993_v53 = vpop.permute.xlu0 %992 }
 0x236   : > { %1765 = vst [vmem:[%s3059_s7 + $0x68] sm:$0xf] %v1749_v13  ;;  %v1110_v26 = vsel %vm998_vm0, %v997_v35, %v993_v53  ;;  %v1027_v55 = vsel %vm998_vm0, %v987_v23, %v989_v25  ;;  %v1028_v0 = vsel %vm998_vm0, %v989_v25, %v3428_v4  ;;  %v1318_v4 = vsel %vm1223_vm1, %v3436_v42, %v3418_v31  ;;  %v1605_v23 = vld [vmem:[#allocation10 + $0x168] sm:$0xff] }
 0x237   : > { %v1511_v9 = vmul.f32 %v1463_v44, %v1110_v26  ;;  %v1506_v7 = vmul.f32 %v1458_v16, %v1027_v55  ;;  %v1507_v3 = vmul.f32 %v1459_v58, %v1028_v0  ;;  %v1650_v39 = vmul.f32 %v1602_v29, %v1318_v4 }
 0x239   : > { %v1559_v2 = vadd.f32 %v1511_v9, %v1415_v34  ;;  %v1554_v61 = vadd.f32 %v1506_v7, %v1410_v20  ;;  %v1555_v32 = vadd.f32 %v1507_v3, %v1411_v50 }
 0x23d   : > { %v995_v10 = vpop.permute.xlu1 %994  ;;  %v1142_v33 = vpop.permute.xlu0 %1141 }
 0x23e   : > { %v1029_v19 = vsel %vm998_vm0, %v993_v53, %v995_v10  ;;  %v1030_v12 = vsel %vm998_vm0, %v995_v10, %v997_v35  ;;  %v1255_v60 = vsel %vm1223_vm1, %v1222_v63, %v1142_v33  ;;  %v1698_v53 = vadd.f32 %v1650_v39, %v1554_v61 }
 0x23f   : > { %v1655_v15 = vmul.f32 %v1607_v38, %v1255_v60  ;;  %v1509_v18 = vmul.f32 %v1461_v36, %v1029_v19  ;;  %v1510_v48 = vmul.f32 %v1462_v43, %v1030_v12 }
 0x241   : > { %v1703_v52 = vadd.f32 %v1655_v15, %v1559_v2  ;;  %v1557_v28 = vadd.f32 %v1509_v18, %v1413_v49  ;;  %v1558_v51 = vadd.f32 %v1510_v48, %v1414_v47 }
 0x243   : > { %v1751_v22 = vpack.c.bf16 %v1703_v52, %v1703_v52 }
 0x245   : > { %1767 = vst [vmem:[%s3059_s7 + $0x78] sm:$0xf] %v1751_v22  ;;  %v1220_v57 = vpop.permute.xlu1 %1219  ;;  %v1218_v40 = vpop.permute.xlu0 %1217 }
 0x246   : > { %v1254_v30 = vsel %vm1223_vm1, %v1220_v57, %v1222_v63  ;;  %v1319_v59 = vsel %vm1223_vm1, %v1142_v33, %v1220_v57  ;;  %v1252_v14 = vsel %vm1223_vm1, %v3418_v31, %v1218_v40  ;;  %v1253_v17 = vsel %vm1223_vm1, %v1218_v40, %v3436_v42 }
 0x247   : > { %v1653_v35 = vmul.f32 %v1605_v23, %v1319_v59  ;;  %v1654_v27 = vmul.f32 %v1606_v8, %v1254_v30  ;;  %v1651_v13 = vmul.f32 %v1603_v54, %v1252_v14  ;;  %v1652_v25 = vmul.f32 %v1604_v5, %v1253_v17 }
 0x249   : > { %v1701_v31 = vadd.f32 %v1653_v35, %v1557_v28  ;;  %v1702_v42 = vadd.f32 %v1654_v27, %v1558_v51  ;;  %v1699_v44 = vadd.f32 %v1651_v13, %v1555_v32  ;;  %v1700_v26 = vadd.f32 %v1652_v25, %v1556_v56 }
 0x24b   : > { %v1719_v62 = vpack.c.bf16 %v1702_v42, %v1701_v31  ;;  %v1718_v9 = vpack.c.bf16 %v1699_v44, %v1698_v53  ;;  %v1750_v63 = vpack.c.bf16 %v1700_v26, %v1700_v26 }
 0x24d   : > { %1735 = vst [vmem:[%s3056_s29 + $0x78] sm:$0xff] %v1719_v62 }
 0x24e   : > { %1734 = vst [vmem:[%s3056_s29 + $0x70] sm:$0xff] %v1718_v9 }
 0x24f   : > { %1766 = vst [vmem:[%s3059_s7 + $0x70] sm:$0xf] %v1750_v63 }
 0x250   : > { %2536 = shalt.err (!%p2533_p0)
}
 0x251   : > { %s2645_s29 = smov 128   ;;  %s2646_s7 = smov 8  }
 0x252   : > { %2259 = dma.vmem_to_hbm [thread:$0]  (%p2783_p7), %s1822_s27, 2048, %s1824_s9, %s1801_s16, %s2645_s29, %s2645_s29, %s2646_s7  }
 0x253   : > { %s1806_s13 = scalar_lea.sflag [#allocation13], %s2804_s28  ;;  %s2551_s17 = sshra.s32 %s3482_s30, 4  ;;  %s2552_s17 = int_to_ptr.hbm [resolvable:$true] %s2551_s17 }
 0x254   : > { %s2553_s19 = scalar_lea.hbm %s2552_s17, 128  ;;  %s2557_s2 = scalar_lea.hbm %s3542_s6, 256 }
 0x255   : > { %p2554_p3 = scmp.ne.s32.totalorder %s2552_s17, %s2553_s19  ;;  %p2558_p2 = scmp.lt.s32.totalorder %s2552_s17, %s3542_s6 }
 0x256   : > { %p2559_p1 = scmp.lt.s32.totalorder %s2557_s2, %s2553_s19 }
 0x257   : > { %p2555_p5 = pnand %p2554_p3, %p2783_p7 }
 0x258   : > { %p2560_p4 = por %p2559_p1, %p2558_p2 }
 0x259   : > { %p2556_p9 = pneg %p2555_p5 }
 0x25b   : > { %p2561_p8 = pnand %p2560_p4, %p2556_p9 }
 0x25d   : > { %2564 = shalt.err (!%p2561_p8)
}
 0x25e   : > { %2260 = dma.vmem_to_hbm [thread:$0]  (%p2783_p7), %s3485_s1, 2048, %s3482_s30, %s1806_s13, %s2645_s29, %s2645_s29, %s2646_s7  }
 0x25f PF: > { %s1858_s28 = sand.u32 1, %s2611_s21   ;;  %p2281_p10 = pnand %p2018_p11, %p2731_p6 }
 0x260   : > { %s1859_s27 = scalar_lea.sflag [#allocation4], %s1858_s28 }
 0x261   : > { %p2282_p12 = pneg %p2281_p10 }
 0x263   : > { %2602 = dma.done.wait (%p2282_p12), %s1859_s27, 2048  }
 0x264   : > { %2604 = vsyncadd (%p2282_p12), %s1859_s27, 4294965248  ;;  %s1869_s9 = scalar_lea.sflag [#allocation13], %s1858_s28 }
 0x265   : > { %2606 = dma.done.wait (%p2282_p12), %s1869_s9, 2048  }
 0x266   : > { %2608 = vsyncadd (%p2282_p12), %s1869_s9, 4294965248  ;;  %s28_s26 = sadd.s32 1, %s2631_s26   ;;  %s3559_s21 = smov %s2615_s22 }
 0x267   : > { %p25_p13 = scmp.ge.s32.totalorder %s28_s26, 4   ;;  %s3560_s22 = smov %s2619_s23 }
 0x268   : > { %s3561_s23 = smov %s2792_s14  ;;  %s3562_s24 = smov %s2627_s25 }
 0x269   : > { %s3563_s25 = smov %s3565_s18  ;;  %27 = sbr.rel (!%p25_p13) target bundleno = 15 (0xf), region = 121 }
 0x26e   :  { %1875 = vsyncpa [#allocation3], 1 }
 0x26f   :  { %1877 = vsyncpa [#allocation3 + $0x1], 1 }
 0x270   :  { %1878 = vsyncpa [#allocation6], 1 }
 0x271   :  { %1879 = vsyncpa [#allocation9], 1 }
 0x272   :  { %1880 = vsyncpa [#allocation4], 1 }
 0x273   :  { %1882 = vsyncpa [#allocation4 + $0x1], 1 }
 0x274   :  { %1883 = vsyncpa [#allocation13], 1 }
 0x275   :  { %1885 = vsyncpa [#allocation13 + $0x1], 1 }

</bundles_post_ra>
